<compile_context>
chip_gen: v7x
topology: tpu7x:2x2x1
jax: 0.10.0
libtpu: 0.0.40
codegen_flags: <defaults>
</compile_context>

<pallas_src>
import functools

import jax
import jax.numpy as jnp
from jax.experimental import pallas as pl
from jax.experimental.pallas import tpu as pltpu

EPS = 1e-5


def _round_up(a, b):
    return (a + b - 1) // b * b


def _pad_rows(x, n_pad):
    n = x.shape[0]
    if n == n_pad:
        return x
    pad = jnp.zeros((n_pad - n,) + x.shape[1:], x.dtype)
    return jnp.concatenate([x, pad], axis=0)


def _vmem_spec():
    return pl.BlockSpec(memory_space=pltpu.MemorySpace.VMEM)


# ---------------------------------------------------------------------------
# Pallas kernels
# ---------------------------------------------------------------------------
def _feast_kernel(first_ref, ntiles_ref,                    # scalar prefetch (SMEM)
                  xj_ref, dstr_ref, dstc_ref, x_ref,
                  rows_ref, cols_ref, invdeg_ref,
                  w_ref, u_ref, c_ref, b_ref, qexp_ref, ssum_ref,
                  out_ref, acc_ref, *, tn):
    """FeaStConv segment reduction over dst-sorted edge tiles.

    grid = (node_tiles, edge_tiles_per_node_tile); the second axis is the
    reduction axis ('arbitrary', last).  acc_ref is a per-node-tile VMEM
    accumulator; padded / out-of-tile edges vanish through the one-hot masks.
    """
    nt = pl.program_id(0)
    k = pl.program_id(1)

    @pl.when(k == 0)
    def _():
        acc_ref[...] = jnp.zeros_like(acc_ref)

    @pl.when(k < ntiles_ref[nt])
    def _():
        base = nt * tn
        xj = xj_ref[...]                                   # [TE, Cin]
        x_tile = x_ref[...]                                # [TN, Cin]

        # in-kernel gather of xi from the resident node tile (one-hot matmul).
        # rows/cols iotas are hoisted resident inputs, not rebuilt per step.
        oh_g = (dstc_ref[...] == (cols_ref[...] + base)).astype(jnp.float32)  # [TE, TN]
        xi = jnp.dot(oh_g, x_tile, preferred_element_type=jnp.float32)        # [TE, Cin]

        # attention over M heads: q = softmax((x_j - x_i) @ u + c)
        q = jnp.dot(xj - xi, u_ref[...],
                    preferred_element_type=jnp.float32) + c_ref[...]           # [TE, M]
        q = jnp.exp(q - jnp.max(q, axis=-1, keepdims=True))
        q = q * pl.reciprocal(jnp.sum(q, axis=-1, keepdims=True), approx=False)

        # single wide MXU matmul over all heads; per-head weighting via a
        # constant kron matmul and head-summing via a selection matmul.
        # TODO(synk): bf16 operands (exact one-hots, rounded x) would use the
        # MXU's native bf16 path but risk the 1e-3 reference tolerance.
        t = jnp.dot(xj, w_ref[...],
                    preferred_element_type=jnp.float32)                        # [TE, M*Cout]
        qw = jnp.dot(q, qexp_ref[...],
                     preferred_element_type=jnp.float32)                       # [TE, M*Cout]
        msg = jnp.dot(qw * t, ssum_ref[...],
                      preferred_element_type=jnp.float32)                      # [TE, Cout]

        # scatter-add into this node tile via a [TN, TE] one-hot matmul.
        oh_s = ((rows_ref[...] + base) == dstr_ref[...]).astype(jnp.float32)   # [TN, TE]
        acc_ref[...] += jnp.dot(oh_s, msg, preferred_element_type=jnp.float32)

    @pl.when(k == pl.num_programs(1) - 1)
    def _():
        # mean aggregation (1/deg) + bias
        out_ref[...] = acc_ref[...] * invdeg_ref[...] + b_ref[...]


def _bn_stats_kernel(x_ref, s1_ref, s2_ref):
    """Per-row-tile accumulation of sum / sum-of-squares (training-mode BN)."""
    @pl.when(pl.program_id(0) == 0)
    def _():
        s1_ref[...] = jnp.zeros_like(s1_ref)
        s2_ref[...] = jnp.zeros_like(s2_ref)
    x = x_ref[...]                                         # [TR, C] (zero padded rows)
    s1_ref[...] += jnp.sum(x, axis=0, keepdims=True)
    s2_ref[...] += jnp.sum(x * x, axis=0, keepdims=True)


def _bn_apply_kernel(*refs, inv_n, relu, has_identity):
    """Gridded normalize + affine (+ residual add) (+ ReLU)."""
    if has_identity:
        x_ref, s1_ref, s2_ref, g_ref, b_ref, id_ref, o_ref = refs
    else:
        x_ref, s1_ref, s2_ref, g_ref, b_ref, o_ref = refs
        id_ref = None
    x = x_ref[...]                                         # [TR, C]
    mean = s1_ref[...] * inv_n
    var = s2_ref[...] * inv_n - mean * mean                # biased variance
    y = (x - mean) * jax.lax.rsqrt(var + EPS)
    y = y * g_ref[...] + b_ref[...]
    if has_identity:
        y = y + id_ref[...]
    if relu:
        y = jnp.maximum(y, 0.0)
    o_ref[...] = y


def _shortcut_kernel(idr_ref, w_ref, b_ref, g_ref, be_ref, out_ref):
    """Conv1d(kernel_size=1) + BatchNorm1d on a [Cin, N] slab (batch dim = 1).

    Layout is already feature-major (N on lanes -> lane dense).
    TODO(synk): for very large N (v7x VMEM) this should become a two-pass
    N-tiled kernel like the BN path; kept whole-array here.
    """
    idr = idr_ref[...]                                                    # [Cin, N]
    y = jnp.dot(w_ref[...], idr, preferred_element_type=jnp.float32)      # [Cout, N]
    y = y + b_ref[...]
    mean = jnp.mean(y, axis=1, keepdims=True)
    var = jnp.mean(jnp.square(y - mean), axis=1, keepdims=True)
    y = (y - mean) * jax.lax.rsqrt(var + EPS)
    out_ref[...] = y * g_ref[...] + be_ref[...]


# ---------------------------------------------------------------------------
# Host-side edge preprocessing (shared by both FeaStConv layers)
# ---------------------------------------------------------------------------
def _prepare_edges(edge_index, n):
    """Add self loops, sort edges by dst, pad, and build per-node-tile tables."""
    loops = jnp.arange(n, dtype=edge_index.dtype)
    src = jnp.concatenate([edge_index[0], loops])      # source j
    dst = jnp.concatenate([edge_index[1], loops])      # target i (flow='source_to_target')
    e_total = int(src.shape[0])

    # small node tile: keeps the one-hot scatter cheap and the parallel axis
    # well populated (v7x has 2 TCs sharded along it).
    tn = min(64, _round_up(n, 8))
    n_pad = _round_up(n, tn)
    nt_count = n_pad // tn
    te = min(512, _round_up(e_total, 128))             # edge tile (lane multiple)
    e_pad = _round_up(e_total, te)
    num_et = e_pad // te

    order = jnp.argsort(dst)
    src_s = src[order]
    dst_s = dst[order]

    pad = e_pad - e_total
    src_p = jnp.concatenate([src_s, jnp.zeros((pad,), src_s.dtype)])
    dst_p = jnp.concatenate([dst_s, jnp.full((pad,), n_pad, dst_s.dtype)])

    deg = jnp.zeros((n_pad,), jnp.float32).at[dst].add(1.0)
    inv_deg = jnp.where(deg > 0, 1.0 / deg, 0.0).reshape(n_pad, 1)

    # contiguous edge ranges per node tile (edges are dst-sorted)
    bounds = jnp.arange(nt_count + 1, dtype=dst_s.dtype) * tn
    starts = jnp.searchsorted(dst_s, bounds[:-1], side="left")
    ends = jnp.searchsorted(dst_s, bounds[1:], side="left")
    nonempty = ends > starts
    first = jnp.where(nonempty, starts // te, 0).astype(jnp.int32)
    last = jnp.where(nonempty, jnp.maximum(ends - 1, 0) // te, 0).astype(jnp.int32)
    ntiles = jnp.where(nonempty, last - first + 1, 1).astype(jnp.int32)

    try:
        kmax = int(jnp.max(ntiles))          # concrete graph: tight grid bound
    except Exception:                        # traced graph: static worst case
        kmax = num_et

    return dict(
        n=n, n_pad=n_pad, tn=tn, te=te, kmax=max(int(kmax), 1),
        src=src_p,
        dst_row=dst_p.reshape(1, e_pad).astype(jnp.int32),
        dst_col=dst_p.reshape(e_pad, 1).astype(jnp.int32),
        inv_deg=inv_deg,
        first=first, ntiles=ntiles,
    )


# ---------------------------------------------------------------------------
# Wrappers
# ---------------------------------------------------------------------------
def feast_conv(x, prep, w, u, c, bias):
    n, cin = x.shape
    heads = u.shape[1]
    cout = w.shape[1] // heads
    tn, te = prep["tn"], prep["te"]
    n_pad = prep["n_pad"]

    # TODO(synk): gather xj per edge-tile inside the kernel (manual DMA gather)
    # instead of materializing one [E_pad, Cin] array via XLA glue.
    xj = x[prep["src"]]                     # [E_pad, Cin] source-node features
    x_pad = _pad_rows(x, n_pad)             # resident per-node-tile features

    # hoisted one-hot index constants (resident, constant index map)
    rows_iota = jnp.arange(tn, dtype=jnp.int32).reshape(tn, 1)
    cols_iota = jnp.arange(tn, dtype=jnp.int32).reshape(1, tn)

    # constant head-expansion / head-sum matrices (MXU path; no 16-lane slices)
    qexp = jnp.kron(jnp.eye(heads, dtype=jnp.float32),
                    jnp.ones((1, cout), jnp.float32))          # [M, M*Cout]
    ssum = jnp.kron(jnp.ones((heads, 1), jnp.float32),
                    jnp.eye(cout, dtype=jnp.float32))          # [M*Cout, Cout]

    def et_map(i, k, fr, nr):
        # clamp so skipped steps re-use the already-resident edge tile (no DMA)
        return (fr[i] + jnp.minimum(k, nr[i] - 1), 0)

    def et_map_row(i, k, fr, nr):
        return (0, fr[i] + jnp.minimum(k, nr[i] - 1))

    def nt_map(i, k, fr, nr):
        return (i, 0)

    def const_map(i, k, fr, nr):
        return (0, 0)

    kern = functools.partial(_feast_kernel, tn=tn)
    grid = (n_pad // tn, prep["kmax"])

    # TODO(synk): pipeline_mode=pl.Buffered(3) on the edge-stream specs would
    # deepen the pipeline for the ~16 KB edge-tile DMAs; left at default depth.
    out = pl.pallas_call(
        kern,
        out_shape=jax.ShapeDtypeStruct((n_pad, cout), jnp.float32),
        grid_spec=pltpu.PrefetchScalarGridSpec(
            num_scalar_prefetch=2,
            grid=grid,
            in_specs=[
                pl.BlockSpec((te, cin), et_map),                       # xj
                pl.BlockSpec((1, te), et_map_row),                     # dst (row)
                pl.BlockSpec((te, 1), et_map),                         # dst (col)
                pl.BlockSpec((tn, cin), nt_map),                       # x node tile
                pl.BlockSpec((tn, 1), const_map),                      # rows iota
                pl.BlockSpec((1, tn), const_map),                      # cols iota
                pl.BlockSpec((tn, 1), nt_map),                         # 1/deg
                pl.BlockSpec((cin, heads * cout), const_map),          # w
                pl.BlockSpec((cin, heads), const_map),                 # u
                pl.BlockSpec((1, heads), const_map),                   # c
                pl.BlockSpec((1, cout), const_map),                    # bias
                pl.BlockSpec((heads, heads * cout), const_map),        # qexp
                pl.BlockSpec((heads * cout, cout), const_map),         # ssum
            ],
            out_specs=pl.BlockSpec((tn, cout), nt_map),
            scratch_shapes=[pltpu.VMEM((tn, cout), jnp.float32)],
        ),
        compiler_params=pltpu.CompilerParams(
            dimension_semantics=("parallel", "arbitrary"),
            vmem_limit_bytes=32 * 1024 * 1024,
        ),
    )(prep["first"], prep["ntiles"],
      xj, prep["dst_row"], prep["dst_col"], x_pad,
      rows_iota, cols_iota, prep["inv_deg"],
      w, u, c.reshape(1, heads), bias.reshape(1, cout), qexp, ssum)

    # TODO(synk): out block is only Cout=16 lanes wide (masked stores); a
    # feature-major [Cout, N] output layout would be lane dense but requires a
    # transposed scatter matmul.
    return out[:n]


def batch_norm_act(x, gamma, beta, identity=None, relu=True):
    """Training-mode BatchNorm1d (+ optional residual add) (+ optional ReLU).

    Two tiled, pipelined Pallas passes: (1) per-row-tile sum/sumsq accumulation,
    (2) gridded normalize/affine/add/ReLU.  Padded rows are zero so they do not
    perturb the statistics (divide by the true n).
    """
    n, c = x.shape
    tr = min(512, _round_up(n, 8))
    n_pad = _round_up(n, tr)
    n_tiles = n_pad // tr
    x_p = _pad_rows(x, n_pad)

    row_spec = pl.BlockSpec((tr, c), lambda i: (i, 0))
    const_spec = pl.BlockSpec((1, c), lambda i: (0, 0))

    s1, s2 = pl.pallas_call(
        _bn_stats_kernel,
        out_shape=(jax.ShapeDtypeStruct((1, c), jnp.float32),
                   jax.ShapeDtypeStruct((1, c), jnp.float32)),
        grid=(n_tiles,),
        in_specs=[row_spec],
        out_specs=(const_spec, const_spec),
        compiler_params=pltpu.CompilerParams(
            dimension_semantics=("arbitrary",)),
    )(x_p)

    in_arrays = [x_p, s1, s2, gamma.reshape(1, c), beta.reshape(1, c)]
    in_specs = [row_spec, const_spec, const_spec, const_spec, const_spec]
    if identity is not None:
        in_arrays.append(_pad_rows(identity, n_pad))
        in_specs.append(row_spec)

    kern = functools.partial(_bn_apply_kernel, inv_n=1.0 / n, relu=relu,
                             has_identity=identity is not None)
    out = pl.pallas_call(
        kern,
        out_shape=jax.ShapeDtypeStruct((n_pad, c), jnp.float32),
        grid=(n_tiles,),
        in_specs=in_specs,
        out_specs=row_spec,
        compiler_params=pltpu.CompilerParams(
            dimension_semantics=("parallel",)),
    )(*in_arrays)
    return out[:n]


def projection_shortcut(id_raw, wp, bp, gp, bep):
    cout, cin = wp.shape
    n = id_raw.shape[1]
    return pl.pallas_call(
        _shortcut_kernel,
        out_shape=jax.ShapeDtypeStruct((cout, n), jnp.float32),
        in_specs=[_vmem_spec()] * 5,
        out_specs=_vmem_spec(),
    )(id_raw, wp, bp.reshape(cout, 1), gp.reshape(cout, 1), bep.reshape(cout, 1))


def residual_feast_block(x, edge_index, p):
    n, cin = x.shape
    heads = p["u1"].shape[1]
    cout = p["w1"].shape[1] // heads

    prep = _prepare_edges(edge_index, n)     # shared by both FeaStConv layers

    h = feast_conv(x, prep, p["w1"], p["u1"], p["c1"], p["b1"])
    h = batch_norm_act(h, p["g1"], p["be1"], identity=None, relu=True)
    h = feast_conv(h, prep, p["w2"], p["u2"], p["c2"], p["b2"])

    if cin != cout:
        # raw reshape [N, Cin] -> [Cin, N], matching torch .view(1, nfeat, N, 1).squeeze(-1)
        # TODO(synk): the raw .view reinterpret between the [Cout, N] projection
        # output and the [N, Cout] residual add has no clean in-kernel relayout,
        # so the reshapes stay host-side glue between the two kernels.
        id_raw = x.reshape(cin, n)
        ident = projection_shortcut(id_raw, p["wp"], p["bp"], p["gp"], p["bep"])
        ident = ident.reshape(n, cout)       # raw reshape, matching .view(N, -1)
    else:
        ident = x

    return batch_norm_act(h, p["g2"], p["be2"], identity=ident, relu=True)


# ---------------------------------------------------------------------------
# Pure-JAX reference (for correctness check)
# ---------------------------------------------------------------------------
def _ref_feast(x, edge_index, w, u, c, bias):
    n = x.shape[0]
    heads = u.shape[1]
    cout = w.shape[1] // heads
    loops = jnp.arange(n, dtype=edge_index.dtype)
    src = jnp.concatenate([edge_index[0], loops])
    dst = jnp.concatenate([edge_index[1], loops])
    xj, xi = x[src], x[dst]
    q = jax.nn.softmax((xj - xi) @ u + c, axis=-1)
    t = (xj @ w).reshape(-1, heads, cout)
    msg = (t * q[:, :, None]).sum(axis=1)
    out = jnp.zeros((n, cout)).at[dst].add(msg)
    deg = jnp.zeros((n,)).at[dst].add(1.0)
    return out / deg[:, None] + bias


def _ref_bn(x, g, b, axis):
    mean = x.mean(axis=axis, keepdims=True)
    var = ((x - mean) ** 2).mean(axis=axis, keepdims=True)
    shape = [1, 1]
    shape[1 - axis] = -1
    return (x - mean) / jnp.sqrt(var + EPS) * g.reshape(shape) + b.reshape(shape)


def _ref_block(x, edge_index, p):
    n, cin = x.shape
    heads = p["u1"].shape[1]
    cout = p["w1"].shape[1] // heads
    h = _ref_feast(x, edge_index, p["w1"], p["u1"], p["c1"], p["b1"])
    h = jnp.maximum(_ref_bn(h, p["g1"], p["be1"], axis=0), 0.0)
    h = _ref_feast(h, edge_index, p["w2"], p["u2"], p["c2"], p["b2"])
    h = _ref_bn(h, p["g2"], p["be2"], axis=0)
    if cin != cout:
        idr = x.reshape(cin, n)
        y = p["wp"] @ idr + p["bp"][:, None]
        y = _ref_bn(y, p["gp"], p["bep"], axis=1)
        ident = y.reshape(n, cout)
    else:
        ident = x
    return jnp.maximum(h + ident, 0.0)


# ---------------------------------------------------------------------------
if __name__ == "__main__":
    N, E, CIN, COUT, M = 16, 32, 8, 16, 4

    key = jax.random.PRNGKey(0)
    keys = jax.random.split(key, 16)

    x = jax.random.normal(keys[0], (N, CIN), dtype=jnp.float32)
    src = jax.random.randint(keys[1], (E,), 0, N, dtype=jnp.int32)
    dst = jax.random.randint(keys[2], (E,), 0, N, dtype=jnp.int32)
    dst = jnp.where(src == dst, (dst + 1) % N, dst)   # avoid input self-loops
    edge_index = jnp.stack([src, dst], axis=0)        # [2, E], row0=source, row1=target

    params = {
        # FeaStConv 1 (nfeat -> nfeato)
        "w1": 0.1 * jax.random.normal(keys[3], (CIN, M * COUT), jnp.float32),
        "u1": 0.1 * jax.random.normal(keys[4], (CIN, M), jnp.float32),
        "c1": 0.1 * jax.random.normal(keys[5], (M,), jnp.float32),
        "b1": 0.1 * jax.random.normal(keys[6], (COUT,), jnp.float32),
        # BN1 (PyTorch default init)
        "g1": jnp.ones((COUT,), jnp.float32),
        "be1": jnp.zeros((COUT,), jnp.float32),
        # FeaStConv 2 (nfeato -> nfeato)
        "w2": 0.1 * jax.random.normal(keys[7], (COUT, M * COUT), jnp.float32),
        "u2": 0.1 * jax.random.normal(keys[8], (COUT, M), jnp.float32),
        "c2": 0.1 * jax.random.normal(keys[9], (M,), jnp.float32),
        "b2": 0.1 * jax.random.normal(keys[10], (COUT,), jnp.float32),
        # BN2
        "g2": jnp.ones((COUT,), jnp.float32),
        "be2": jnp.zeros((COUT,), jnp.float32),
        # projection shortcut: Conv1d(CIN, COUT, k=1) + BN
        "wp": 0.1 * jax.random.normal(keys[11], (COUT, CIN), jnp.float32),
        "bp": 0.1 * jax.random.normal(keys[12], (COUT,), jnp.float32),
        "gp": jnp.ones((COUT,), jnp.float32),
        "bep": jnp.zeros((COUT,), jnp.float32),
    }

    out = residual_feast_block(x, edge_index, params)
    out = jax.block_until_ready(out)

    ref = _ref_block(x, edge_index, params)
    assert out.shape == (N, COUT)
    assert jnp.allclose(out, ref, rtol=1e-3, atol=1e-3), (
        f"max abs err {jnp.max(jnp.abs(out - ref))}")

    print("KERNEL_OK")
</pallas_src>

<mosaic_0001>
module attributes {stable_mosaic.version = 11 : i64} {
  func.func @_feast_kernel(%arg0: i32, %arg1: i32, %arg2: memref<1xi32, #tpu.memory_space<smem>>, %arg3: memref<1xi32, #tpu.memory_space<smem>>, %arg4: memref<128x8xf32, #tpu.memory_space<vmem>>, %arg5: memref<1x128xi32, #tpu.memory_space<vmem>>, %arg6: memref<128x1xi32, #tpu.memory_space<vmem>>, %arg7: memref<16x8xf32, #tpu.memory_space<vmem>>, %arg8: memref<16x1xi32, #tpu.memory_space<vmem>>, %arg9: memref<1x16xi32, #tpu.memory_space<vmem>>, %arg10: memref<16x1xf32, #tpu.memory_space<vmem>>, %arg11: memref<8x64xf32, #tpu.memory_space<vmem>>, %arg12: memref<8x4xf32, #tpu.memory_space<vmem>>, %arg13: memref<1x4xf32, #tpu.memory_space<vmem>>, %arg14: memref<1x16xf32, #tpu.memory_space<vmem>>, %arg15: memref<4x64xf32, #tpu.memory_space<vmem>>, %arg16: memref<64x16xf32, #tpu.memory_space<vmem>>, %arg17: memref<16x16xf32, #tpu.memory_space<vmem>>, %arg18: memref<16x16xf32, #tpu.memory_space<vmem>>) attributes {dimension_semantics = [#tpu.dimension_semantics<parallel>, #tpu.dimension_semantics<arbitrary>], iteration_bounds = array<i64: 1, 1>, scalar_prefetch = 2 : i64, scratch_operands = 1 : i64, tpu.core_type = #tpu.core_type<tc>, window_params = [{transform_indices = @transform_0, window_bounds = array<i64: 128, 8>}, {transform_indices = @transform_1, window_bounds = array<i64: 1, 128>}, {transform_indices = @transform_2, window_bounds = array<i64: 128, 1>}, {transform_indices = @transform_3, window_bounds = array<i64: 16, 8>}, {pipeline_mode = #tpu.pipeline_mode<synchronous>, transform_indices = @transform_4, window_bounds = array<i64: 16, 1>}, {pipeline_mode = #tpu.pipeline_mode<synchronous>, transform_indices = @transform_5, window_bounds = array<i64: 1, 16>}, {transform_indices = @transform_6, window_bounds = array<i64: 16, 1>}, {pipeline_mode = #tpu.pipeline_mode<synchronous>, transform_indices = @transform_7, window_bounds = array<i64: 8, 64>}, {pipeline_mode = #tpu.pipeline_mode<synchronous>, transform_indices = @transform_8, window_bounds = array<i64: 8, 4>}, {pipeline_mode = #tpu.pipeline_mode<synchronous>, transform_indices = @transform_9, window_bounds = array<i64: 1, 4>}, {pipeline_mode = #tpu.pipeline_mode<synchronous>, transform_indices = @transform_10, window_bounds = array<i64: 1, 16>}, {pipeline_mode = #tpu.pipeline_mode<synchronous>, transform_indices = @transform_11, window_bounds = array<i64: 4, 64>}, {pipeline_mode = #tpu.pipeline_mode<synchronous>, transform_indices = @transform_12, window_bounds = array<i64: 64, 16>}, {transform_indices = @transform_13, window_bounds = array<i64: 16, 16>}]} {
    %c0_i32 = arith.constant 0 : i32
    %0 = arith.cmpi eq, %arg1, %c0_i32 : i32
    %1 = arith.extui %0 : i1 to i32
    %c0_i32_0 = arith.constant 0 : i32
    %2 = arith.cmpi ne, %1, %c0_i32_0 : i32
    scf.if %2 {
      %cst = arith.constant 0.000000e+00 : f32
      %11 = vector.broadcast %cst : f32 to vector<16x16xf32>
      %c0 = arith.constant 0 : index
      %c0_4 = arith.constant 0 : index
      %12 = vector.load %arg18[%c0, %c0_4] : memref<16x16xf32, #tpu.memory_space<vmem>>, vector<16x16xf32>
      tpu.vector_store %arg18[%c0, %c0_4], %11 {strides = array<i32>} : memref<16x16xf32, #tpu.memory_space<vmem>>, vector<16x16xf32>,
    } else {
    }
    %3 = arith.index_cast %arg0 : i32 to index
    %4 = memref.load %arg3[%3] : memref<1xi32, #tpu.memory_space<smem>>
    %5 = arith.cmpi slt, %arg1, %4 : i32
    %6 = arith.extui %5 : i1 to i32
    %c0_i32_1 = arith.constant 0 : i32
    %7 = arith.cmpi ne, %6, %c0_i32_1 : i32
    scf.if %7 {
      %c16_i32 = arith.constant 16 : i32
      %11 = arith.muli %arg0, %c16_i32 : i32
      %c0 = arith.constant 0 : index
      %c0_4 = arith.constant 0 : index
      %12 = vector.load %arg4[%c0, %c0_4] : memref<128x8xf32, #tpu.memory_space<vmem>>, vector<128x8xf32>
      %c0_5 = arith.constant 0 : index
      %c0_6 = arith.constant 0 : index
      %13 = vector.load %arg7[%c0_5, %c0_6] : memref<16x8xf32, #tpu.memory_space<vmem>>, vector<16x8xf32>
      %c0_7 = arith.constant 0 : index
      %c0_8 = arith.constant 0 : index
      %14 = vector.load %arg6[%c0_7, %c0_8] : memref<128x1xi32, #tpu.memory_space<vmem>>, vector<128x1xi32>
      %c0_9 = arith.constant 0 : index
      %c0_10 = arith.constant 0 : index
      %15 = vector.load %arg9[%c0_9, %c0_10] : memref<1x16xi32, #tpu.memory_space<vmem>>, vector<1x16xi32>
      %16 = vector.broadcast %11 : i32 to vector<1x16xi32>
      %17 = arith.addi %15, %16 : vector<1x16xi32>
      %18 = vector.broadcast %14 : vector<128x1xi32> to vector<128x16xi32>
      %19 = vector.broadcast %17 : vector<1x16xi32> to vector<128x16xi32>
      %20 = arith.cmpi eq, %18, %19 : vector<128x16xi32>
      %21 = arith.extui %20 : vector<128x16xi1> to vector<128x16xi32>
      %22 = arith.sitofp %21 : vector<128x16xi32> to vector<128x16xf32>
      %cst = arith.constant dense<0.000000e+00> : vector<128x8xf32>
      %23 = tpu.matmul %22, %13, %cst {dimension_numbers = #tpu.dot_dimension_numbers<[1], [0], [0], [1], [0, 0, 1, 1], [], []>} : vector<128x16xf32>, vector<16x8xf32>, vector<128x8xf32> -> vector<128x8xf32>
      %24 = arith.subf %12, %23 : vector<128x8xf32>
      %c0_11 = arith.constant 0 : index
      %c0_12 = arith.constant 0 : index
      %25 = vector.load %arg12[%c0_11, %c0_12] : memref<8x4xf32, #tpu.memory_space<vmem>>, vector<8x4xf32>
      %cst_13 = arith.constant dense<0.000000e+00> : vector<128x4xf32>
      %26 = tpu.matmul %24, %25, %cst_13 {dimension_numbers = #tpu.dot_dimension_numbers<[1], [0], [0], [1], [0, 0, 1, 1], [], []>} : vector<128x8xf32>, vector<8x4xf32>, vector<128x4xf32> -> vector<128x4xf32>
      %c0_14 = arith.constant 0 : index
      %c0_15 = arith.constant 0 : index
      %27 = vector.load %arg13[%c0_14, %c0_15] : memref<1x4xf32, #tpu.memory_space<vmem>>, vector<1x4xf32>
      %28 = vector.broadcast %27 : vector<1x4xf32> to vector<128x4xf32>
      %29 = arith.addf %26, %28 : vector<128x4xf32>
      %cst_16 = arith.constant dense<0xFF800000> : vector<128xf32>
      %30 = vector.multi_reduction <maximumf>, %29, %cst_16 [1] : vector<128x4xf32> to vector<128xf32>
      %31 = vector.shape_cast %30 : vector<128xf32> to vector<128x1xf32>
      %32 = vector.broadcast %31 : vector<128x1xf32> to vector<128x4xf32>
      %33 = arith.subf %29, %32 : vector<128x4xf32>
      %34 = math.exp %33 : vector<128x4xf32>
      %cst_17 = arith.constant dense<0.000000e+00> : vector<128xf32>
      %35 = vector.multi_reduction <add>, %34, %cst_17 [1] : vector<128x4xf32> to vector<128xf32>
      %36 = vector.shape_cast %35 : vector<128xf32> to vector<128x1xf32>
      %37 = tpu.reciprocal %36 : vector<128x1xf32> -> vector<128x1xf32>
      %38 = vector.broadcast %37 : vector<128x1xf32> to vector<128x4xf32>
      %39 = arith.mulf %34, %38 : vector<128x4xf32>
      %c0_18 = arith.constant 0 : index
      %c0_19 = arith.constant 0 : index
      %40 = vector.load %arg11[%c0_18, %c0_19] : memref<8x64xf32, #tpu.memory_space<vmem>>, vector<8x64xf32>
      %cst_20 = arith.constant dense<0.000000e+00> : vector<128x64xf32>
      %41 = tpu.matmul %12, %40, %cst_20 {dimension_numbers = #tpu.dot_dimension_numbers<[1], [0], [0], [1], [0, 0, 1, 1], [], []>} : vector<128x8xf32>, vector<8x64xf32>, vector<128x64xf32> -> vector<128x64xf32>
      %c0_21 = arith.constant 0 : index
      %c0_22 = arith.constant 0 : index
      %42 = vector.load %arg15[%c0_21, %c0_22] : memref<4x64xf32, #tpu.memory_space<vmem>>, vector<4x64xf32>
      %cst_23 = arith.constant dense<0.000000e+00> : vector<128x64xf32>
      %43 = tpu.matmul %39, %42, %cst_23 {dimension_numbers = #tpu.dot_dimension_numbers<[1], [0], [0], [1], [0, 0, 1, 1], [], []>} : vector<128x4xf32>, vector<4x64xf32>, vector<128x64xf32> -> vector<128x64xf32>
      %44 = arith.mulf %43, %41 : vector<128x64xf32>
      %c0_24 = arith.constant 0 : index
      %c0_25 = arith.constant 0 : index
      %45 = vector.load %arg16[%c0_24, %c0_25] : memref<64x16xf32, #tpu.memory_space<vmem>>, vector<64x16xf32>
      %cst_26 = arith.constant dense<0.000000e+00> : vector<128x16xf32>
      %46 = tpu.matmul %44, %45, %cst_26 {dimension_numbers = #tpu.dot_dimension_numbers<[1], [0], [0], [1], [0, 0, 1, 1], [], []>} : vector<128x64xf32>, vector<64x16xf32>, vector<128x16xf32> -> vector<128x16xf32>
      %c0_27 = arith.constant 0 : index
      %c0_28 = arith.constant 0 : index
      %47 = vector.load %arg8[%c0_27, %c0_28] : memref<16x1xi32, #tpu.memory_space<vmem>>, vector<16x1xi32>
      %48 = vector.broadcast %11 : i32 to vector<16x1xi32>
      %49 = arith.addi %47, %48 : vector<16x1xi32>
      %c0_29 = arith.constant 0 : index
      %c0_30 = arith.constant 0 : index
      %50 = vector.load %arg5[%c0_29, %c0_30] : memref<1x128xi32, #tpu.memory_space<vmem>>, vector<1x128xi32>
      %51 = vector.broadcast %49 : vector<16x1xi32> to vector<16x128xi32>
      %52 = vector.broadcast %50 : vector<1x128xi32> to vector<16x128xi32>
      %53 = arith.cmpi eq, %51, %52 : vector<16x128xi32>
      %54 = arith.extui %53 : vector<16x128xi1> to vector<16x128xi32>
      %55 = arith.sitofp %54 : vector<16x128xi32> to vector<16x128xf32>
      %c0_31 = arith.constant 0 : index
      %c0_32 = arith.constant 0 : index
      %56 = vector.load %arg18[%c0_31, %c0_32] : memref<16x16xf32, #tpu.memory_space<vmem>>, vector<16x16xf32>
      %cst_33 = arith.constant dense<0.000000e+00> : vector<16x16xf32>
      %57 = tpu.matmul %55, %46, %cst_33 {dimension_numbers = #tpu.dot_dimension_numbers<[1], [0], [0], [1], [0, 0, 1, 1], [], []>} : vector<16x128xf32>, vector<128x16xf32>, vector<16x16xf32> -> vector<16x16xf32>
      %58 = arith.addf %56, %57 : vector<16x16xf32>
      %c0_34 = arith.constant 0 : index
      %c0_35 = arith.constant 0 : index
      %59 = vector.load %arg18[%c0_34, %c0_35] : memref<16x16xf32, #tpu.memory_space<vmem>>, vector<16x16xf32>
      tpu.vector_store %arg18[%c0_34, %c0_35], %58 {strides = array<i32>} : memref<16x16xf32, #tpu.memory_space<vmem>>, vector<16x16xf32>,
    } else {
    }
    %c0_i32_2 = arith.constant 0 : i32
    %8 = arith.cmpi eq, %arg1, %c0_i32_2 : i32
    %9 = arith.extui %8 : i1 to i32
    %c0_i32_3 = arith.constant 0 : i32
    %10 = arith.cmpi ne, %9, %c0_i32_3 : i32
    scf.if %10 {
      %c0 = arith.constant 0 : index
      %c0_4 = arith.constant 0 : index
      %11 = vector.load %arg18[%c0, %c0_4] : memref<16x16xf32, #tpu.memory_space<vmem>>, vector<16x16xf32>
      %c0_5 = arith.constant 0 : index
      %c0_6 = arith.constant 0 : index
      %12 = vector.load %arg10[%c0_5, %c0_6] : memref<16x1xf32, #tpu.memory_space<vmem>>, vector<16x1xf32>
      %13 = vector.broadcast %12 : vector<16x1xf32> to vector<16x16xf32>
      %14 = arith.mulf %11, %13 : vector<16x16xf32>
      %c0_7 = arith.constant 0 : index
      %c0_8 = arith.constant 0 : index
      %15 = vector.load %arg14[%c0_7, %c0_8] : memref<1x16xf32, #tpu.memory_space<vmem>>, vector<1x16xf32>
      %16 = vector.broadcast %15 : vector<1x16xf32> to vector<16x16xf32>
      %17 = arith.addf %14, %16 : vector<16x16xf32>
      %c0_9 = arith.constant 0 : index
      %c0_10 = arith.constant 0 : index
      %18 = vector.load %arg17[%c0_9, %c0_10] : memref<16x16xf32, #tpu.memory_space<vmem>>, vector<16x16xf32>
      tpu.vector_store %arg17[%c0_9, %c0_10], %17 {strides = array<i32>} : memref<16x16xf32, #tpu.memory_space<vmem>>, vector<16x16xf32>,
    } else {
    }
    return
  }
  func.func @transform_0(%arg0: i32, %arg1: i32, %arg2: memref<1xi32, #tpu.memory_space<smem>>, %arg3: memref<1xi32, #tpu.memory_space<smem>>) -> (i32, i32) {
    %0 = arith.index_cast %arg0 : i32 to index
    %1 = memref.load %arg2[%0] : memref<1xi32, #tpu.memory_space<smem>>
    %2 = arith.index_cast %arg0 : i32 to index
    %3 = memref.load %arg3[%2] : memref<1xi32, #tpu.memory_space<smem>>
    %c1_i32 = arith.constant 1 : i32
    %4 = arith.subi %3, %c1_i32 : i32
    %5 = arith.minsi %arg1, %4 : i32
    %6 = arith.addi %1, %5 : i32
    %c0_i32 = arith.constant 0 : i32
    %c0_i32_0 = arith.constant 0 : i32
    return %6, %c0_i32 : i32, i32
  }
  func.func @transform_1(%arg0: i32, %arg1: i32, %arg2: memref<1xi32, #tpu.memory_space<smem>>, %arg3: memref<1xi32, #tpu.memory_space<smem>>) -> (i32, i32) {
    %0 = arith.index_cast %arg0 : i32 to index
    %1 = memref.load %arg2[%0] : memref<1xi32, #tpu.memory_space<smem>>
    %2 = arith.index_cast %arg0 : i32 to index
    %3 = memref.load %arg3[%2] : memref<1xi32, #tpu.memory_space<smem>>
    %c1_i32 = arith.constant 1 : i32
    %4 = arith.subi %3, %c1_i32 : i32
    %5 = arith.minsi %arg1, %4 : i32
    %6 = arith.addi %1, %5 : i32
    %c0_i32 = arith.constant 0 : i32
    %c0_i32_0 = arith.constant 0 : i32
    return %c0_i32, %6 : i32, i32
  }
  func.func @transform_2(%arg0: i32, %arg1: i32, %arg2: memref<1xi32, #tpu.memory_space<smem>>, %arg3: memref<1xi32, #tpu.memory_space<smem>>) -> (i32, i32) {
    %0 = arith.index_cast %arg0 : i32 to index
    %1 = memref.load %arg2[%0] : memref<1xi32, #tpu.memory_space<smem>>
    %2 = arith.index_cast %arg0 : i32 to index
    %3 = memref.load %arg3[%2] : memref<1xi32, #tpu.memory_space<smem>>
    %c1_i32 = arith.constant 1 : i32
    %4 = arith.subi %3, %c1_i32 : i32
    %5 = arith.minsi %arg1, %4 : i32
    %6 = arith.addi %1, %5 : i32
    %c0_i32 = arith.constant 0 : i32
    %c0_i32_0 = arith.constant 0 : i32
    return %6, %c0_i32 : i32, i32
  }
  func.func @transform_3(%arg0: i32, %arg1: i32, %arg2: memref<1xi32, #tpu.memory_space<smem>>, %arg3: memref<1xi32, #tpu.memory_space<smem>>) -> (i32, i32) {
    %c0_i32 = arith.constant 0 : i32
    %c0_i32_0 = arith.constant 0 : i32
    return %arg0, %c0_i32 : i32, i32
  }
  func.func @transform_4(%arg0: i32, %arg1: i32, %arg2: memref<1xi32, #tpu.memory_space<smem>>, %arg3: memref<1xi32, #tpu.memory_space<smem>>) -> (i32, i32) {
    %c0_i32 = arith.constant 0 : i32
    %c0_i32_0 = arith.constant 0 : i32
    %c0_i32_1 = arith.constant 0 : i32
    return %c0_i32, %c0_i32_0 : i32, i32
  }
  func.func @transform_5(%arg0: i32, %arg1: i32, %arg2: memref<1xi32, #tpu.memory_space<smem>>, %arg3: memref<1xi32, #tpu.memory_space<smem>>) -> (i32, i32) {
    %c0_i32 = arith.constant 0 : i32
    %c0_i32_0 = arith.constant 0 : i32
    %c0_i32_1 = arith.constant 0 : i32
    return %c0_i32, %c0_i32_0 : i32, i32
  }
  func.func @transform_6(%arg0: i32, %arg1: i32, %arg2: memref<1xi32, #tpu.memory_space<smem>>, %arg3: memref<1xi32, #tpu.memory_space<smem>>) -> (i32, i32) {
    %c0_i32 = arith.constant 0 : i32
    %c0_i32_0 = arith.constant 0 : i32
    return %arg0, %c0_i32 : i32, i32
  }
  func.func @transform_7(%arg0: i32, %arg1: i32, %arg2: memref<1xi32, #tpu.memory_space<smem>>, %arg3: memref<1xi32, #tpu.memory_space<smem>>) -> (i32, i32) {
    %c0_i32 = arith.constant 0 : i32
    %c0_i32_0 = arith.constant 0 : i32
    %c0_i32_1 = arith.constant 0 : i32
    return %c0_i32, %c0_i32_0 : i32, i32
  }
  func.func @transform_8(%arg0: i32, %arg1: i32, %arg2: memref<1xi32, #tpu.memory_space<smem>>, %arg3: memref<1xi32, #tpu.memory_space<smem>>) -> (i32, i32) {
    %c0_i32 = arith.constant 0 : i32
    %c0_i32_0 = arith.constant 0 : i32
    %c0_i32_1 = arith.constant 0 : i32
    return %c0_i32, %c0_i32_0 : i32, i32
  }
  func.func @transform_9(%arg0: i32, %arg1: i32, %arg2: memref<1xi32, #tpu.memory_space<smem>>, %arg3: memref<1xi32, #tpu.memory_space<smem>>) -> (i32, i32) {
    %c0_i32 = arith.constant 0 : i32
    %c0_i32_0 = arith.constant 0 : i32
    %c0_i32_1 = arith.constant 0 : i32
    return %c0_i32, %c0_i32_0 : i32, i32
  }
  func.func @transform_10(%arg0: i32, %arg1: i32, %arg2: memref<1xi32, #tpu.memory_space<smem>>, %arg3: memref<1xi32, #tpu.memory_space<smem>>) -> (i32, i32) {
    %c0_i32 = arith.constant 0 : i32
    %c0_i32_0 = arith.constant 0 : i32
    %c0_i32_1 = arith.constant 0 : i32
    return %c0_i32, %c0_i32_0 : i32, i32
  }
  func.func @transform_11(%arg0: i32, %arg1: i32, %arg2: memref<1xi32, #tpu.memory_space<smem>>, %arg3: memref<1xi32, #tpu.memory_space<smem>>) -> (i32, i32) {
    %c0_i32 = arith.constant 0 : i32
    %c0_i32_0 = arith.constant 0 : i32
    %c0_i32_1 = arith.constant 0 : i32
    return %c0_i32, %c0_i32_0 : i32, i32
  }
  func.func @transform_12(%arg0: i32, %arg1: i32, %arg2: memref<1xi32, #tpu.memory_space<smem>>, %arg3: memref<1xi32, #tpu.memory_space<smem>>) -> (i32, i32) {
    %c0_i32 = arith.constant 0 : i32
    %c0_i32_0 = arith.constant 0 : i32
    %c0_i32_1 = arith.constant 0 : i32
    return %c0_i32, %c0_i32_0 : i32, i32
  }
  func.func @transform_13(%arg0: i32, %arg1: i32, %arg2: memref<1xi32, #tpu.memory_space<smem>>, %arg3: memref<1xi32, #tpu.memory_space<smem>>) -> (i32, i32) {
    %c0_i32 = arith.constant 0 : i32
    %c0_i32_0 = arith.constant 0 : i32
    return %arg0, %c0_i32 : i32, i32
  }
}

</mosaic_0001>

<bundles_post_ra>
// kernel: tpu_custom_call.1
= control target key start
LH: loop header
LB: loop body
LE: loop exit
PB: predicated region body
PF: predicated region fallthrough
CT: control target
= control target key end

     0   :  { %22 = vsyncpa [#allocation7], 0  ;;  %vm186_vm0 = vcmask 130048   ;;  %v2257_v0 = vmov 0.0   ;;  %s2816_s0 = inlined_call_operand.<no memory space> [shape: s32[1], index: 0, kind: input, shape index: {}]   ;;  %s2817_s1 = inlined_call_operand.<no memory space> [shape: s32[1], index: 1, kind: input, shape index: {}]   ;;  %s2818_s2 = inlined_call_operand.vmem [shape: f32[128,8], index: 2, kind: input, shape index: {}]   ;;  %s2819_s3 = inlined_call_operand.vmem [shape: s32[1,128], index: 3, kind: input, shape index: {}]   ;;  %s2820_s4 = inlined_call_operand.vmem [shape: s32[128,1], index: 4, kind: input, shape index: {}]   ;;  %s2821_s5 = inlined_call_operand.vmem [shape: f32[16,8], index: 5, kind: input, shape index: {}]   ;;  %s2822_s6 = inlined_call_operand.vmem [shape: s32[16,1], index: 6, kind: input, shape index: {}]   ;;  %s2823_s7 = inlined_call_operand.vmem [shape: s32[1,16], index: 7, kind: input, shape index: {}]   ;;  %s2824_s8 = inlined_call_operand.vmem [shape: f32[16,1], index: 8, kind: input, shape index: {}]   ;;  %s2825_s9 = inlined_call_operand.vmem [shape: f32[8,64], index: 9, kind: input, shape index: {}]   ;;  %s2826_s10 = inlined_call_operand.vmem [shape: f32[8,4], index: 10, kind: input, shape index: {}]   ;;  %s2827_s11 = inlined_call_operand.vmem [shape: f32[1,4], index: 11, kind: input, shape index: {}]   ;;  %s2828_s12 = inlined_call_operand.vmem [shape: f32[1,16], index: 12, kind: input, shape index: {}]   ;;  %s2829_s13 = inlined_call_operand.vmem [shape: f32[4,64], index: 13, kind: input, shape index: {}]   ;;  %s2830_s14 = inlined_call_operand.vmem [shape: f32[64,16], index: 14, kind: input, shape index: {}]   ;;  %s2831_s15 = inlined_call_operand.hbm [shape: f32[16,16], index: 15, kind: output, shape index: {}]  }
   0x1   :  { %s1695_s20 = sadd.s32 4294967295, %s2817_s1  ;;  %187 = vst.msk [vmem:[#allocation2] sm:$0xff] %vm186_vm0, %v2257_v0  ;;  %188 = vst.msk [vmem:[#allocation2 + $0x8] sm:$0xff] %vm186_vm0, %v2257_v0  ;;  %p1706_p3 = scmp.le.s32.totalorder %s2817_s1, 0 }
   0x2   :  { %p1696_p0 = scmp.gt.s32.totalorder %s1695_s20, 0  ;;  %v2258_v3 = vmov (!%p1706_p3), 0   ;;  %v211_v6 = vld [vmem:[%s2821_s5] sm:$0xff] (!%p1706_p3)  ;;  %v212_v7 = vld [vmem:[%s2821_s5 + $0x8] sm:$0xff] (!%p1706_p3)  ;;  %v2259_v25 = vmov (!%p1706_p3), 0.0  }
   0x3   :  { %2167 = vset.pattern.permute.xlu1 (!%p1706_p3), %v2258_v3  ;;  %2166 = vset.pattern.permute.xlu0 (!%p1706_p3), %v2258_v3  ;;  %v2104_v10 = vpack.c.bf16 (!%p1706_p3), %v212_v7, %v211_v6  ;;  %v542_v21 = vld [vmem:[%s2826_s10] sm:$0xff] (!%p1706_p3) }
   0x4   :  { %s2833_s20 = smov (%p1696_p0, %s1695_s20), 0  ;;  %2156 = vmatprep.subr.mxu1 (!%p1706_p3), %v542_v21  ;;  %v2400_v22 = vld [vmem:[%s2823_s7] ss:$0 sm:$0xff] (!%p1706_p3) }
   0x5   :  { %s136_s23 = sadd.s32 %s2833_s20, %s2816_s0  ;;  %193 = sbr.rel (%p1706_p3) target bundleno = 1576 (0x628), region = 61  ;;  %2105 = vmatprep.subr.bf16.mxu0 (!%p1706_p3), %v2104_v10  ;;  %2157 = vmatpush3.msra.mxu1 (!%p1706_p3), %v542_v21 }
   0x6   :  { %s1697_s24 = sshll.u32 %s136_s23, 4  ;;  %p155_p1 = scmp.lt.s32.totalorder %s136_s23, 0  ;;  %2107 = vmatpush3.bf16.msra.mxu0 (!%p1706_p3), %v2104_v10 }
   0x7   :  { %p138_p2 = scmp.lt.s32.totalorder %s1697_s24, 15  ;;  %1951 = vmatprep.subr.mxu0 (!%p1706_p3), %v542_v21 }
   0x8   :  { %s2835_s23 = smov (!%p155_p1, %s136_s23), 0 }
   0x9   :  { %s2837_s24 = smov (!%p138_p2, %s1697_s24), 15  ;;  %s157_s27 = scalar_lea.vmem %s2819_s3, %s2835_s23 }
   0xa   :  { %s1698_s28 = sshll.u32 %s2837_s24, 3 }
   0xb   :  { %s2362_s16 = scalar_lea.vmem %s2818_s2, %s1698_s28  ;;  %s2367_s0 = scalar_lea.vmem %s2820_s4, %s1698_s28 }
   0xc   :  { %v215_v1 = vld [vmem:[%s2367_s0 + $0x10] sm:$0xff]  ;;  %v213_v2 = vld [vmem:[%s2367_s0] sm:$0xff]  ;;  %v216_v4 = vld [vmem:[%s2367_s0 + $0x18] sm:$0xff] }
   0xd   :  { %239 = vperm.xlu1 %2167, %v215_v1   ;;  %233 = vperm.xlu0 %2166, %v213_v2   ;;  %v214_v5 = vld [vmem:[%s2367_s0 + $0x8] sm:$0xff]  ;;  %v217_v9 = vld [vmem:[%s2367_s0 + $0x20] sm:$0xff]  ;;  %v220_v11 = vld [vmem:[%s2367_s0 + $0x38] sm:$0xff] }
   0xe   :  { %v218_v8 = vld [vmem:[%s2367_s0 + $0x28] sm:$0xff]  ;;  %v219_v12 = vld [vmem:[%s2367_s0 + $0x30] sm:$0xff]  ;;  %v221_v14 = vld [vmem:[%s2367_s0 + $0x40] sm:$0xff] }
   0xf   :  { %v222_v13 = vld [vmem:[%s2367_s0 + $0x48] sm:$0xff]  ;;  %v224_v15 = vld [vmem:[%s2367_s0 + $0x58] sm:$0xff]  ;;  %v223_v16 = vld [vmem:[%s2367_s0 + $0x50] sm:$0xff] }
  0x10   :  { %v226_v17 = vld [vmem:[%s2367_s0 + $0x68] sm:$0xff]  ;;  %v225_v18 = vld [vmem:[%s2367_s0 + $0x60] sm:$0xff]  ;;  %v228_v19 = vld [vmem:[%s2367_s0 + $0x78] sm:$0xff] }
  0x11   :  { %242 = vperm.xlu1 %2167, %v216_v4   ;;  %236 = vperm.xlu0 %2166, %v214_v5   ;;  %v227_v20 = vld [vmem:[%s2367_s0 + $0x70] sm:$0xff]  ;;  %v2435_v56 = vld [vmem:[%s2362_s16] sm:$0xff]  ;;  %v2438_v57 = vld [vmem:[%s2362_s16 + $0x8] sm:$0xff] }
  0x12   :  { %v2443_v62 = vld [vmem:[%s2362_s16 + $0x10] sm:$0xff]  ;;  %v2446_v63 = vld [vmem:[%s2362_s16 + $0x18] sm:$0xff]  ;;  %v2453_v4 = vld [vmem:[%s2362_s16 + $0x20] sm:$0xff] }
  0x13   :  { %v2456_v5 = vld [vmem:[%s2362_s16 + $0x28] sm:$0xff]  ;;  %v2463_v10 = vld [vmem:[%s2362_s16 + $0x30] sm:$0xff] }
  0x15   :  { %248 = vperm.xlu1 %2167, %v218_v8   ;;  %245 = vperm.xlu0 %2166, %v217_v9  }
  0x19   :  { %254 = vperm.xlu1 %2167, %v220_v11   ;;  %251 = vperm.xlu0 %2166, %v219_v12   ;;  %v2466_v11 = vld [vmem:[%s2362_s16 + $0x38] sm:$0xff] }
  0x1d   :  { %260 = vperm.xlu1 %2167, %v222_v13   ;;  %257 = vperm.xlu0 %2166, %v221_v14  }
  0x21   :  { %266 = vperm.xlu1 %2167, %v224_v15   ;;  %263 = vperm.xlu0 %2166, %v223_v16   ;;  %v2473_v16 = vld [vmem:[%s2362_s16 + $0x40] sm:$0xff] }
  0x25   :  { %272 = vperm.xlu1 %2167, %v226_v17   ;;  %269 = vperm.xlu0 %2166, %v225_v18   ;;  %v2476_v17 = vld [vmem:[%s2362_s16 + $0x48] sm:$0xff] }
  0x29   :  { %278 = vperm.xlu1 %2167, %v228_v19   ;;  %275 = vperm.xlu0 %2166, %v227_v20  }
  0x8c   :  { %v240_v23 = vpop.permute.xlu1 %239  ;;  %v234_v24 = vpop.permute.xlu0 %233 }
  0x8d   :  { %vm284_vm1 = vcmp.eq.s32.totalorder %v234_v24, %v2400_v22  ;;  %vm286_vm2 = vcmp.eq.s32.totalorder %v240_v23, %v2400_v22  ;;  %v2486_v23 = vld [vmem:[%s2362_s16 + $0x58] sm:$0xff] }
  0x8e   :  { %v1708_v26 = vsel %vm284_vm1, 1.0, %v2259_v25  ;;  %v1710_v29 = vsel %vm286_vm2, 1.0, %v2259_v25  ;;  %vm550_vm2 = vcmask 64512  }
  0x8f   :  { %1927 = vmatprep.mubr.msk.f32.mxu0 %vm186_vm0, %v1708_v26 }
  0x90   :  { %v243_v27 = vpop.permute.xlu1 %242  ;;  %v237_v28 = vpop.permute.xlu0 %236 }
  0x91   :  { %vm285_vm3 = vcmp.eq.s32.totalorder %v237_v28, %v2400_v22  ;;  %vm287_vm4 = vcmp.eq.s32.totalorder %v243_v27, %v2400_v22  ;;  %v2493_v28 = vld [vmem:[%s2362_s16 + $0x60] sm:$0xff] }
  0x92   :  { %v1709_v30 = vsel %vm285_vm3, 1.0, %v2259_v25  ;;  %v1711_v33 = vsel %vm287_vm4, 1.0, %v2259_v25  ;;  %vm744_vm3 = vcmask 31744   ;;  %vm1164_vm4 = vcmask 1043456  }
  0x93   :  { %1928 = vmatmul.mubr.msk.f32.vlgmr.msra.gmra.mrb[0].mxu0 %vm186_vm0, %v1709_v30 }
  0x94   :  { %v249_v31 = vpop.permute.xlu1 %248  ;;  %v246_v32 = vpop.permute.xlu0 %245  ;;  %1930 = vmatprep.mubr.msk.f32.mxu0 %vm186_vm0, %v1710_v29  ;;  %1952 = vmatpush3.msra.mxu0 %v542_v21  ;;  %v2496_v29 = vld [vmem:[%s2362_s16 + $0x68] sm:$0xff] }
  0x95   :  { %vm288_vm5 = vcmp.eq.s32.totalorder %v246_v32, %v2400_v22  ;;  %vm289_vm6 = vcmp.eq.s32.totalorder %v249_v31, %v2400_v22 }
  0x96   :  { %v1712_v34 = vsel %vm288_vm5, 1.0, %v2259_v25  ;;  %v1713_v37 = vsel %vm289_vm6, 1.0, %v2259_v25  ;;  %vm1337_vm6 = vcmask 523264  }
  0x97   :  { %1931 = vmatmul.mubr.msk.f32.gmra.mrb[2].mxu0 %vm186_vm0, %v1711_v33 }
  0x98   :  { %v255_v35 = vpop.permute.xlu1 %254  ;;  %v252_v36 = vpop.permute.xlu0 %251  ;;  %1933 = vmatprep.mubr.msk.f32.mxu0 %vm186_vm0, %v1712_v34  ;;  %v2503_v34 = vld [vmem:[%s2362_s16 + $0x70] sm:$0xff] }
  0x99   :  { %vm290_vm7 = vcmp.eq.s32.totalorder %v252_v36, %v2400_v22  ;;  %vm291_vm8 = vcmp.eq.s32.totalorder %v255_v35, %v2400_v22  ;;  %v2506_v35 = vld [vmem:[%s2362_s16 + $0x78] sm:$0xff] }
  0x9a   :  { %v1714_v38 = vsel %vm290_vm7, 1.0, %v2259_v25  ;;  %v1715_v41 = vsel %vm291_vm8, 1.0, %v2259_v25 }
  0x9b   :  { %1934 = vmatmul.mubr.msk.f32.gmra.mrb[4].mxu0 %vm186_vm0, %v1713_v37 }
  0x9c   :  { %v261_v39 = vpop.permute.xlu1 %260  ;;  %v258_v40 = vpop.permute.xlu0 %257  ;;  %1936 = vmatprep.mubr.msk.f32.mxu0 %vm186_vm0, %v1714_v38 }
  0x9d   :  { %vm292_vm9 = vcmp.eq.s32.totalorder %v258_v40, %v2400_v22  ;;  %vm293_vm10 = vcmp.eq.s32.totalorder %v261_v39, %v2400_v22  ;;  %v1740_v40 = vld [vmem:[%s2827_s11] ss:$0 sm:$0xff] }
  0x9e   :  { %v1716_v42 = vsel %vm292_vm9, 1.0, %v2259_v25  ;;  %v1717_v45 = vsel %vm293_vm10, 1.0, %v2259_v25 }
  0x9f   :  { %1937 = vmatmul.mubr.msk.f32.gmra.mrb[6].mxu0 %vm186_vm0, %v1715_v41 }
  0xa0   :  { %v267_v43 = vpop.permute.xlu1 %266  ;;  %v264_v44 = vpop.permute.xlu0 %263  ;;  %1939 = vmatprep.mubr.msk.f32.mxu0 %vm186_vm0, %v1716_v42 }
  0xa1   :  { %vm294_vm11 = vcmp.eq.s32.totalorder %v264_v44, %v2400_v22  ;;  %vm295_vm12 = vcmp.eq.s32.totalorder %v267_v43, %v2400_v22 }
  0xa2   :  { %v1718_v46 = vsel %vm294_vm11, 1.0, %v2259_v25  ;;  %v1719_v49 = vsel %vm295_vm12, 1.0, %v2259_v25 }
  0xa3   :  { %1940 = vmatmul.mubr.msk.f32.gmra.mrb[8].mxu0 %vm186_vm0, %v1717_v45 }
  0xa4   :  { %v273_v47 = vpop.permute.xlu1 %272  ;;  %v270_v48 = vpop.permute.xlu0 %269  ;;  %1942 = vmatprep.mubr.msk.f32.mxu0 %vm186_vm0, %v1718_v46 }
  0xa5   :  { %vm296_vm13 = vcmp.eq.s32.totalorder %v270_v48, %v2400_v22  ;;  %vm297_vm14 = vcmp.eq.s32.totalorder %v273_v47, %v2400_v22 }
  0xa6   :  { %v1720_v50 = vsel %vm296_vm13, 1.0, %v2259_v25  ;;  %v1721_v53 = vsel %vm297_vm14, 1.0, %v2259_v25 }
  0xa7   :  { %1943 = vmatmul.mubr.msk.f32.gmra.mrb[10].mxu0 %vm186_vm0, %v1719_v49 }
  0xa8   :  { %v279_v51 = vpop.permute.xlu1 %278  ;;  %v276_v52 = vpop.permute.xlu0 %275  ;;  %1945 = vmatprep.mubr.msk.f32.mxu0 %vm186_vm0, %v1720_v50 }
  0xa9   :  { %vm298_vm15 = vcmp.eq.s32.totalorder %v276_v52, %v2400_v22  ;;  %vm299_vm1 = vcmp.eq.s32.totalorder %v279_v51, %v2400_v22  ;;  %v2483_v22 = vld [vmem:[%s2362_s16 + $0x50] sm:$0xff] }
  0xaa   :  { %v1722_v54 = vsel %vm298_vm15, 1.0, %v2259_v25  ;;  %v1723_v55 = vsel %vm299_vm1, 1.0, %v2259_v25 }
  0xab   :  { %1946 = vmatmul.mubr.msk.f32.gmra.mrb[12].mxu0 %vm186_vm0, %v1721_v53 }
  0xac   :  { %1948 = vmatprep.mubr.msk.f32.mxu0 %vm186_vm0, %v1722_v54 }
  0xaf   :  { %1949 = vmatmul.mubr.msk.f32.gmra.mrb[14].mxu0 %vm186_vm0, %v1723_v55 }
 0x166   :  { %v1929_v58 = vpop.f32.mrb[0].mxu0 }
 0x167   :  { %v447_v59 = vpop.f32.mrb[1].mxu0  ;;  %v527_v61 = vsub.f32 %v2438_v57, %v1929_v58 }
 0x168   :  { %v526_v60 = vsub.f32 %v2435_v56, %v447_v59 }
 0x16a   :  { %v1932_v0 = vpop.f32.mrb[2].mxu0  ;;  %1953 = vmatprep.mubr.msk.f32.mxu0 %vm550_vm2, %v526_v60 }
 0x16b   :  { %v457_v1 = vpop.f32.mrb[3].mxu0  ;;  %1954 = vmatmul.mubr.msk.f32.vlgmr.msra.gmra.mrb[16].mxu0 %vm550_vm2, %v527_v61  ;;  %v529_v3 = vsub.f32 %v2446_v63, %v1932_v0 }
 0x16c   :  { %v528_v2 = vsub.f32 %v2443_v62, %v457_v1 }
 0x16e   :  { %v1935_v6 = vpop.f32.mrb[4].mxu0  ;;  %1956 = vmatprep.mubr.msk.f32.mxu0 %vm550_vm2, %v528_v2 }
 0x16f   :  { %v467_v7 = vpop.f32.mrb[5].mxu0  ;;  %1957 = vmatmul.mubr.msk.f32.gmra.mrb[18].mxu0 %vm550_vm2, %v529_v3  ;;  %v531_v9 = vsub.f32 %v2456_v5, %v1935_v6 }
 0x170   :  { %v530_v8 = vsub.f32 %v2453_v4, %v467_v7 }
 0x172   :  { %v1938_v12 = vpop.f32.mrb[6].mxu0  ;;  %1959 = vmatprep.mubr.msk.f32.mxu0 %vm550_vm2, %v530_v8 }
 0x173   :  { %v477_v13 = vpop.f32.mrb[7].mxu0  ;;  %1960 = vmatmul.mubr.msk.f32.gmra.mrb[20].mxu0 %vm550_vm2, %v531_v9  ;;  %v533_v15 = vsub.f32 %v2466_v11, %v1938_v12 }
 0x174   :  { %v532_v14 = vsub.f32 %v2463_v10, %v477_v13 }
 0x176   :  { %v1941_v18 = vpop.f32.mrb[8].mxu0  ;;  %1962 = vmatprep.mubr.msk.f32.mxu1 %vm550_vm2, %v532_v14 }
 0x177   :  { %v487_v19 = vpop.f32.mrb[9].mxu0  ;;  %1963 = vmatmul.mubr.msk.f32.vlgmr.msra.gmra.mrb[0].mxu1 %vm550_vm2, %v533_v15  ;;  %v535_v21 = vsub.f32 %v2476_v17, %v1941_v18 }
 0x178   :  { %v534_v20 = vsub.f32 %v2473_v16, %v487_v19 }
 0x17a   :  { %v1944_v24 = vpop.f32.mrb[10].mxu0  ;;  %1965 = vmatprep.mubr.msk.f32.mxu1 %vm550_vm2, %v534_v20 }
 0x17b   :  { %v497_v25 = vpop.f32.mrb[11].mxu0  ;;  %1966 = vmatmul.mubr.msk.f32.gmra.mrb[2].mxu1 %vm550_vm2, %v535_v21  ;;  %v537_v27 = vsub.f32 %v2486_v23, %v1944_v24 }
 0x17c   :  { %v536_v26 = vsub.f32 %v2483_v22, %v497_v25 }
 0x17e   :  { %v1947_v30 = vpop.f32.mrb[12].mxu0  ;;  %1968 = vmatprep.mubr.msk.f32.mxu1 %vm550_vm2, %v536_v26 }
 0x17f   :  { %v507_v31 = vpop.f32.mrb[13].mxu0  ;;  %1969 = vmatmul.mubr.msk.f32.gmra.mrb[4].mxu1 %vm550_vm2, %v537_v27  ;;  %v539_v33 = vsub.f32 %v2496_v29, %v1947_v30 }
 0x180   :  { %v538_v32 = vsub.f32 %v2493_v28, %v507_v31 }
 0x182   :  { %v1950_v36 = vpop.f32.mrb[14].mxu0  ;;  %1971 = vmatprep.mubr.msk.f32.mxu1 %vm550_vm2, %v538_v32 }
 0x183   :  { %v517_v37 = vpop.f32.mrb[15].mxu0  ;;  %1972 = vmatmul.mubr.msk.f32.gmra.mrb[6].mxu1 %vm550_vm2, %v539_v33  ;;  %v541_v39 = vsub.f32 %v2506_v35, %v1950_v36 }
 0x184   :  { %v540_v38 = vsub.f32 %v2503_v34, %v517_v37 }
 0x186   :  { %1974 = vmatprep.mubr.msk.f32.mxu1 %vm550_vm2, %v540_v38 }
 0x187   :  { %1975 = vmatmul.mubr.msk.f32.gmra.mrb[8].mxu1 %vm550_vm2, %v541_v39 }
 0x188   :  { %1979 = vmatprep.mubr.msk.f32.mxu1 %vm550_vm2, %v2435_v56 }
 0x23e   :  { %v1955_v41 = vpop.f32.mrb[16].mxu0 }
 0x23f   :  { %v2519_v42 = vadd.f32 %v1955_v41, %v1740_v40  ;;  %v665_v43 = vpop.f32.mrb[17].mxu0  ;;  %v921_v41 = vld [vmem:[%s2825_s9] sm:$0xff] }
 0x240   :  { %v2521_v44 = vadd.f32 %v1740_v40, %v665_v43  ;;  %1977 = vmatprep.subr.mxu1 %v921_v41 }
 0x241   :  { %v748_v45 = vsel %vm744_vm3, %v2519_v42, -inf  ;;  %1978 = vmatpush3.msra.mxu1 %v921_v41 }
 0x242   :  { %749 = vmax.xlane.f32.xlu1 %v748_v45  ;;  %v1958_v46 = vpop.f32.mrb[18].mxu0  ;;  %v745_v47 = vsel %vm744_vm3, %v2521_v44, -inf  ;;  %1980 = vmatmul.mubr.msk.f32.vlgmr.msra.gmra.mrb[10].mxu1 %vm550_vm2, %v2438_v57 }
 0x243   :  { %v675_v48 = vpop.f32.mrb[19].mxu0  ;;  %746 = vmax.xlane.f32.xlu0 %v745_v47  ;;  %v2529_v50 = vadd.f32 %v1958_v46, %v1740_v40  ;;  %1982 = vmatprep.mubr.msk.f32.mxu1 %vm550_vm2, %v2443_v62 }
 0x244   :  { %v2527_v49 = vadd.f32 %v1740_v40, %v675_v48 }
 0x245   :  { %v754_v59 = vsel %vm744_vm3, %v2529_v50, -inf }
 0x246   :  { %v1961_v51 = vpop.f32.mrb[20].mxu0  ;;  %v751_v52 = vsel %vm744_vm3, %v2527_v49, -inf  ;;  %1983 = vmatmul.mubr.msk.f32.gmra.mrb[12].mxu1 %vm550_vm2, %v2446_v63 }
 0x247   :  { %v685_v53 = vpop.f32.mrb[21].mxu0  ;;  %752 = vmax.xlane.f32.xlu0 %v751_v52  ;;  %v2535_v55 = vadd.f32 %v1961_v51, %v1740_v40  ;;  %1985 = vmatprep.mubr.msk.f32.mxu1 %vm550_vm2, %v2453_v4 }
 0x248   :  { %v2533_v54 = vadd.f32 %v1740_v40, %v685_v53 }
 0x249   :  { %v760_v3 = vsel %vm744_vm3, %v2535_v55, -inf }
 0x24a   :  { %v1964_v56 = vpop.f32.mrb[0].mxu1  ;;  %v757_v58 = vsel %vm744_vm3, %v2533_v54, -inf  ;;  %1986 = vmatmul.mubr.msk.f32.gmra.mrb[14].mxu1 %vm550_vm2, %v2456_v5 }
 0x24b   :  { %v695_v60 = vpop.f32.mrb[1].mxu1  ;;  %758 = vmax.xlane.f32.xlu1 %v757_v58  ;;  %755 = vmax.xlane.f32.xlu0 %v754_v59  ;;  %v2543_v0 = vadd.f32 %v1964_v56, %v1740_v40 }
 0x24c   :  { %v2541_v61 = vadd.f32 %v1740_v40, %v695_v60  ;;  %1988 = vmatprep.mubr.msk.f32.mxu1 %vm550_vm2, %v2463_v10 }
 0x24d   :  { %v766_v13 = vsel %vm744_vm3, %v2543_v0, -inf }
 0x24e   :  { %v1967_v1 = vpop.f32.mrb[2].mxu1  ;;  %v763_v2 = vsel %vm744_vm3, %v2541_v61, -inf  ;;  %1989 = vmatmul.mubr.msk.f32.gmra.mrb[16].mxu1 %vm550_vm2, %v2466_v11 }
 0x24f   :  { %v705_v6 = vpop.f32.mrb[3].mxu1  ;;  %764 = vmax.xlane.f32.xlu1 %v763_v2  ;;  %761 = vmax.xlane.f32.xlu0 %v760_v3  ;;  %v2551_v8 = vadd.f32 %v1967_v1, %v1740_v40 }
 0x250   :  { %v2549_v7 = vadd.f32 %v1740_v40, %v705_v6  ;;  %1991 = vmatprep.mubr.msk.f32.mxu1 %vm550_vm2, %v2473_v16 }
 0x251   :  { %v772_v21 = vsel %vm744_vm3, %v2551_v8, -inf }
 0x252   :  { %v1970_v9 = vpop.f32.mrb[4].mxu1  ;;  %v769_v12 = vsel %vm744_vm3, %v2549_v7, -inf  ;;  %1992 = vmatmul.mubr.msk.f32.gmra.mrb[18].mxu1 %vm550_vm2, %v2476_v17 }
 0x253   :  { %v715_v14 = vpop.f32.mrb[5].mxu1  ;;  %770 = vmax.xlane.f32.xlu1 %v769_v12  ;;  %767 = vmax.xlane.f32.xlu0 %v766_v13  ;;  %v2559_v18 = vadd.f32 %v1970_v9, %v1740_v40 }
 0x254   :  { %v2557_v15 = vadd.f32 %v1740_v40, %v715_v14  ;;  %1994 = vmatprep.mubr.msk.f32.mxu1 %vm550_vm2, %v2483_v22 }
 0x255   :  { %v778_v31 = vsel %vm744_vm3, %v2559_v18, -inf }
 0x256   :  { %v1973_v19 = vpop.f32.mrb[6].mxu1  ;;  %v775_v20 = vsel %vm744_vm3, %v2557_v15, -inf  ;;  %1995 = vmatmul.mubr.msk.f32.gmra.mrb[20].mxu1 %vm550_vm2, %v2486_v23 }
 0x257   :  { %v725_v24 = vpop.f32.mrb[7].mxu1  ;;  %776 = vmax.xlane.f32.xlu1 %v775_v20  ;;  %773 = vmax.xlane.f32.xlu0 %v772_v21  ;;  %v2567_v26 = vadd.f32 %v1973_v19, %v1740_v40 }
 0x258   :  { %v2565_v25 = vadd.f32 %v1740_v40, %v725_v24  ;;  %1997 = vmatprep.mubr.msk.f32.mxu1 %vm550_vm2, %v2493_v28 }
 0x259   :  { %v784_v38 = vsel %vm744_vm3, %v2567_v26, -inf }
 0x25a   :  { %v1976_v27 = vpop.f32.mrb[8].mxu1  ;;  %v781_v30 = vsel %vm744_vm3, %v2565_v25, -inf  ;;  %1998 = vmatmul.mubr.msk.f32.gmra.mrb[22].mxu1 %vm550_vm2, %v2496_v29 }
 0x25b   :  { %v735_v32 = vpop.f32.mrb[9].mxu1  ;;  %782 = vmax.xlane.f32.xlu1 %v781_v30  ;;  %779 = vmax.xlane.f32.xlu0 %v778_v31  ;;  %v2575_v36 = vadd.f32 %v1976_v27, %v1740_v40 }
 0x25c   :  { %v2573_v33 = vadd.f32 %v1740_v40, %v735_v32  ;;  %2000 = vmatprep.mubr.msk.f32.mxu1 %vm550_vm2, %v2503_v34 }
 0x25d   :  { %v790_v39 = vsel %vm744_vm3, %v2575_v36, -inf }
 0x25e   :  { %v787_v37 = vsel %vm744_vm3, %v2573_v33, -inf  ;;  %2001 = vmatmul.mubr.msk.f32.gmra.mrb[24].mxu1 %vm550_vm2, %v2506_v35 }
 0x25f   :  { %788 = vmax.xlane.f32.xlu1 %v787_v37  ;;  %785 = vmax.xlane.f32.xlu0 %v784_v38 }
 0x263   :  { %791 = vmax.xlane.f32.xlu0 %v790_v39 }
 0x2cf   :  { %v750_v57 = vpop.xlane.xlu1 %749 }
 0x2d0   :  { %v794_v62 = vsub.f32 %v2519_v42, %v750_v57  ;;  %v747_v63 = vpop.xlane.xlu0 %746 }
 0x2d1   :  { %v793_v4 = vsub.f32 %v2521_v44, %v747_v63 }
 0x2d2   :  { %v811_v5 = vmul.f32 1.442695, %v794_v62 }
 0x2d3   :  { %v809_v10 = vmul.f32 1.442695, %v793_v4 }
 0x2d4   :  { %2168 = vpow2.f32 %v811_v5  ;;  %v753_v11 = vpop.xlane.xlu0 %752 }
 0x2d5   :  { %2170 = vpow2.f32 %v809_v10  ;;  %v795_v16 = vsub.f32 %v2527_v49, %v753_v11 }
 0x2d7   :  { %v813_v17 = vmul.f32 1.442695, %v795_v16 }
 0x2d8   :  { %v759_v22 = vpop.xlane.xlu1 %758  ;;  %v756_v23 = vpop.xlane.xlu0 %755 }
 0x2d9   :  { %2172 = vpow2.f32 %v813_v17  ;;  %v797_v28 = vsub.f32 %v2533_v54, %v759_v22  ;;  %v796_v29 = vsub.f32 %v2529_v50, %v756_v23  ;;  %v1115_v23 = vld [vmem:[%s2829_s13] sm:$0xf] }
 0x2da   :  { %2003 = vmatprep.subr.msk.mxu0 %vm1164_vm4, %v1115_v23 }
 0x2db   :  { %v817_v34 = vmul.f32 1.442695, %v797_v28  ;;  %v815_v35 = vmul.f32 1.442695, %v796_v29  ;;  %2004 = vmatpush3.msk.msra.mxu0 %vm1164_vm4, %v1115_v23 }
 0x2dc   :  { %v765_v40 = vpop.xlane.xlu1 %764  ;;  %v762_v42 = vpop.xlane.xlu0 %761 }
 0x2dd   :  { %2174 = vpow2.f32 %v817_v34  ;;  %v799_v43 = vsub.f32 %v2541_v61, %v765_v40  ;;  %v798_v44 = vsub.f32 %v2535_v55, %v762_v42 }
 0x2de   :  { %v2623_v45 = vpop.eup %2168  ;;  %2176 = vpow2.f32 %v815_v35 }
 0x2df   :  { %v2625_v46 = vpop.eup %2170  ;;  %v821_v47 = vmul.f32 1.442695, %v799_v43  ;;  %v819_v48 = vmul.f32 1.442695, %v798_v44  ;;  %v844_v49 = vsel %vm744_vm3, %v2623_v45, 0.0  ;;  %v1531_v43 = vld [vmem:[%s2822_s6] sm:$0xff] }
 0x2e0   :  { %v771_v50 = vpop.xlane.xlu1 %770  ;;  %845 = vadd.xlane.f32.xlu0 %v844_v49  ;;  %v768_v51 = vpop.xlane.xlu0 %767  ;;  %v841_v52 = vsel %vm744_vm3, %v2625_v46, 0.0  ;;  %v1532_v44 = vld [vmem:[%s2822_s6 + $0x8] sm:$0xff]  ;;  %v1331_v49 = vld [vmem:[%s2830_s14 + $0x10] sm:$0xff] }
 0x2e1   :  { %2178 = vpow2.f32 %v821_v47  ;;  %v801_v53 = vsub.f32 %v2549_v7, %v771_v50  ;;  %v800_v54 = vsub.f32 %v2543_v0, %v768_v51  ;;  %842 = vadd.xlane.f32.xlu1 %v841_v52  ;;  %v1329_v47 = vld [vmem:[%s2830_s14] sm:$0xff]  ;;  %v1332_v51 = vld [vmem:[%s2830_s14 + $0x18] sm:$0xff] }
 0x2e2   :  { %2180 = vpow2.f32 %v819_v48  ;;  %v1330_v48 = vld [vmem:[%s2830_s14 + $0x8] sm:$0xff]  ;;  %v2112_v52 = vpack.c.bf16 %v1332_v51, %v1331_v49 }
 0x2e3   :  { %v2633_v55 = vpop.eup %2172  ;;  %v825_v56 = vmul.f32 1.442695, %v801_v53  ;;  %v823_v58 = vmul.f32 1.442695, %v800_v54  ;;  %v2108_v50 = vpack.c.bf16 %v1330_v48, %v1329_v47  ;;  %v1333_v53 = vld [vmem:[%s2830_s14 + $0x20] sm:$0xff]  ;;  %v1334_v54 = vld [vmem:[%s2830_s14 + $0x28] sm:$0xff] }
 0x2e4   :  { %v777_v59 = vpop.xlane.xlu1 %776  ;;  %v774_v60 = vpop.xlane.xlu0 %773  ;;  %v847_v61 = vsel %vm744_vm3, %v2633_v55, 0.0 }
 0x2e5   :  { %2182 = vpow2.f32 %v825_v56  ;;  %v803_v1 = vsub.f32 %v2557_v15, %v777_v59  ;;  %v802_v2 = vsub.f32 %v2551_v8, %v774_v60  ;;  %848 = vadd.xlane.f32.xlu1 %v847_v61  ;;  %2109 = vmatprep.subr.bf16.mxu1 %v2108_v50  ;;  %v2116_v56 = vpack.c.bf16 %v1334_v54, %v1333_v53 }
 0x2e6   :  { %2184 = vpow2.f32 %v823_v58  ;;  %2111 = vmatpush3.bf16.msra.mxu1 %v2108_v50 }
 0x2e7   :  { %v2639_v3 = vpop.eup %2174  ;;  %v829_v0 = vmul.f32 1.442695, %v803_v1  ;;  %v827_v6 = vmul.f32 1.442695, %v802_v2  ;;  %2113 = vmatprep.subr.bf16.mxu1 %v2112_v52 }
 0x2e8   :  { %v2641_v7 = vpop.eup %2176  ;;  %v783_v9 = vpop.xlane.xlu1 %782  ;;  %v853_v13 = vsel %vm744_vm3, %v2639_v3, 0.0 }
 0x2e9   :  { %v780_v12 = vpop.xlane.xlu0 %779  ;;  %2186 = vpow2.f32 %v829_v0  ;;  %v805_v14 = vsub.f32 %v2565_v25, %v783_v9  ;;  %854 = vadd.xlane.f32.xlu1 %v853_v13  ;;  %v850_v8 = vsel %vm744_vm3, %v2641_v7, 0.0 }
 0x2ea   :  { %v804_v15 = vsub.f32 %v2559_v18, %v780_v12  ;;  %2188 = vpow2.f32 %v827_v6  ;;  %851 = vadd.xlane.f32.xlu0 %v850_v8  ;;  %2115 = vmatpush3.bf16.msra.mxu1 %v2112_v52 }
 0x2eb   :  { %v2649_v19 = vpop.eup %2178  ;;  %v833_v20 = vmul.f32 1.442695, %v805_v14  ;;  %2117 = vmatprep.subr.bf16.mxu1 %v2116_v56 }
 0x2ec   :  { %v831_v21 = vmul.f32 1.442695, %v804_v15  ;;  %v2651_v24 = vpop.eup %2180  ;;  %v789_v27 = vpop.xlane.xlu1 %788  ;;  %v859_v31 = vsel %vm744_vm3, %v2649_v19, 0.0 }
 0x2ed   :  { %v786_v30 = vpop.xlane.xlu0 %785  ;;  %2190 = vpow2.f32 %v833_v20  ;;  %v807_v18 = vsub.f32 %v2573_v33, %v789_v27  ;;  %860 = vadd.xlane.f32.xlu1 %v859_v31  ;;  %v856_v32 = vsel %vm744_vm3, %v2651_v24, 0.0 }
 0x2ee   :  { %v806_v25 = vsub.f32 %v2567_v26, %v786_v30  ;;  %2192 = vpow2.f32 %v831_v21  ;;  %857 = vadd.xlane.f32.xlu0 %v856_v32  ;;  %2119 = vmatpush3.bf16.msra.mxu1 %v2116_v56 }
 0x2ef   :  { %v2659_v37 = vpop.eup %2182  ;;  %v837_v38 = vmul.f32 1.442695, %v807_v18 }
 0x2f0   :  { %v835_v39 = vmul.f32 1.442695, %v806_v25  ;;  %v2661_v41 = vpop.eup %2184  ;;  %v865_v62 = vsel %vm744_vm3, %v2659_v37, 0.0 }
 0x2f1   :  { %v792_v57 = vpop.xlane.xlu0 %791  ;;  %2194 = vpow2.f32 %v837_v38  ;;  %866 = vadd.xlane.f32.xlu1 %v865_v62  ;;  %v862_v26 = vsel %vm744_vm3, %v2661_v41, 0.0 }
 0x2f2   :  { %v808_v33 = vsub.f32 %v2575_v36, %v792_v57  ;;  %2196 = vpow2.f32 %v835_v39  ;;  %863 = vadd.xlane.f32.xlu0 %v862_v26 }
 0x2f3   :  { %v2668_v63 = vpop.eup %2186 }
 0x2f4   :  { %v839_v4 = vmul.f32 1.442695, %v808_v33  ;;  %v2670_v5 = vpop.eup %2188  ;;  %v871_v10 = vsel %vm744_vm3, %v2668_v63, 0.0 }
 0x2f5   :  { %872 = vadd.xlane.f32.xlu1 %v871_v10  ;;  %v868_v11 = vsel %vm744_vm3, %v2670_v5, 0.0 }
 0x2f6   :  { %2198 = vpow2.f32 %v839_v4  ;;  %869 = vadd.xlane.f32.xlu0 %v868_v11 }
 0x2f7   :  { %v2676_v36 = vpop.eup %2190 }
 0x2f8   :  { %v2678_v16 = vpop.eup %2192  ;;  %v877_v17 = vsel %vm744_vm3, %v2676_v36, 0.0 }
 0x2f9   :  { %878 = vadd.xlane.f32.xlu1 %v877_v17  ;;  %v874_v22 = vsel %vm744_vm3, %v2678_v16, 0.0 }
 0x2fa   :  { %875 = vadd.xlane.f32.xlu0 %v874_v22 }
 0x2fb   :  { %v2687_v28 = vpop.eup %2194 }
 0x2fc   :  { %v2689_v29 = vpop.eup %2196  ;;  %v883_v34 = vsel %vm744_vm3, %v2687_v28, 0.0 }
 0x2fd   :  { %884 = vadd.xlane.f32.xlu1 %v883_v34  ;;  %v880_v35 = vsel %vm744_vm3, %v2689_v29, 0.0 }
 0x2fe   :  { %881 = vadd.xlane.f32.xlu0 %v880_v35 }
 0x300   :  { %v2695_v40 = vpop.eup %2198 }
 0x301   :  { %v886_v42 = vsel %vm744_vm3, %v2695_v40, 0.0 }
 0x302   :  { %887 = vadd.xlane.f32.xlu0 %v886_v42 }
 0x30e   :  { %1537 = vperm.xlu1 %2167, %v1531_v43  }
 0x315   :  { %v2723_v60 = vpop.f32.mrb[10].mxu1 }
 0x316   :  { %v1036_v48 = vpop.f32.mrb[11].mxu1 }
 0x318   :  { %1540 = vperm.xlu0 %2166, %v1532_v44   ;;  %v1336_v44 = vld [vmem:[%s2830_s14 + $0x38] sm:$0xff] }
 0x36d   :  { %v846_v58 = vpop.xlane.xlu0 %845 }
 0x36e   :  { %2200 = vrcp.f32 %v846_v58  ;;  %v843_v59 = vpop.xlane.xlu1 %842 }
 0x36f   :  { %2202 = vrcp.f32 %v843_v59 }
 0x372   :  { %v849_v61 = vpop.xlane.xlu1 %848 }
 0x373   :  { %2204 = vrcp.f32 %v849_v61 }
 0x376   :  { %v855_v1 = vpop.xlane.xlu1 %854 }
 0x377   :  { %2206 = vrcp.f32 %v855_v1  ;;  %v852_v2 = vpop.xlane.xlu0 %851 }
 0x378   :  { %v2201_v0 = vpop.eup %2200  ;;  %2208 = vrcp.f32 %v852_v2 }
 0x379   :  { %v2203_v6 = vpop.eup %2202  ;;  %v906_v13 = vmul.f32 %v2201_v0, %v2623_v45 }
 0x37a   :  { %v861_v9 = vpop.xlane.xlu1 %860  ;;  %v905_v12 = vmul.f32 %v2203_v6, %v2625_v46 }
 0x37b   :  { %2210 = vrcp.f32 %v861_v9  ;;  %v858_v14 = vpop.xlane.xlu0 %857 }
 0x37c   :  { %2212 = vrcp.f32 %v858_v14  ;;  %2005 = vmatprep.mubr.msk.f32.mxu0 %vm744_vm3, %v905_v12 }
 0x37d   :  { %v2205_v15 = vpop.eup %2204  ;;  %2006 = vmatmul.mubr.msk.f32.vlgmr.msra.gmra.mrb[22].mxu0 %vm744_vm3, %v906_v13 }
 0x37e   :  { %v867_v8 = vpop.xlane.xlu1 %866  ;;  %v907_v20 = vmul.f32 %v2205_v15, %v2633_v55 }
 0x37f   :  { %2214 = vrcp.f32 %v867_v8  ;;  %v864_v21 = vpop.xlane.xlu0 %863 }
 0x380   :  { %2216 = vrcp.f32 %v864_v21  ;;  %2008 = vmatprep.mubr.msk.f32.mxu0 %vm744_vm3, %v907_v20 }
 0x381   :  { %v2207_v27 = vpop.eup %2206 }
 0x382   :  { %v2209_v46 = vpop.eup %2208  ;;  %v873_v30 = vpop.xlane.xlu1 %872  ;;  %v909_v45 = vmul.f32 %v2207_v27, %v2639_v3 }
 0x383   :  { %2218 = vrcp.f32 %v873_v30  ;;  %v870_v31 = vpop.xlane.xlu0 %869  ;;  %v908_v18 = vmul.f32 %v2209_v46, %v2641_v7 }
 0x384   :  { %2220 = vrcp.f32 %v870_v31 }
 0x385   :  { %v2211_v25 = vpop.eup %2210  ;;  %2009 = vmatmul.mubr.msk.f32.gmra.mrb[24].mxu0 %vm744_vm3, %v908_v18 }
 0x386   :  { %v2213_v32 = vpop.eup %2212  ;;  %2011 = vmatprep.mubr.msk.f32.mxu0 %vm744_vm3, %v909_v45  ;;  %v879_v55 = vpop.xlane.xlu1 %878  ;;  %v911_v38 = vmul.f32 %v2211_v25, %v2649_v19 }
 0x387   :  { %2222 = vrcp.f32 %v879_v55  ;;  %v876_v39 = vpop.xlane.xlu0 %875  ;;  %v910_v57 = vmul.f32 %v2213_v32, %v2651_v24 }
 0x388   :  { %2224 = vrcp.f32 %v876_v39 }
 0x389   :  { %v2215_v3 = vpop.eup %2214  ;;  %2012 = vmatmul.mubr.msk.f32.gmra.mrb[26].mxu0 %vm744_vm3, %v910_v57 }
 0x38a   :  { %v2217_v62 = vpop.eup %2216  ;;  %2014 = vmatprep.mubr.msk.f32.mxu0 %vm744_vm3, %v911_v38  ;;  %v885_v7 = vpop.xlane.xlu1 %884  ;;  %v913_v33 = vmul.f32 %v2215_v3, %v2659_v37 }
 0x38b   :  { %2226 = vrcp.f32 %v885_v7  ;;  %v882_v26 = vpop.xlane.xlu0 %881  ;;  %v912_v4 = vmul.f32 %v2217_v62, %v2661_v41 }
 0x38c   :  { %2228 = vrcp.f32 %v882_v26 }
 0x38d   :  { %v2219_v19 = vpop.eup %2218  ;;  %2015 = vmatmul.mubr.msk.f32.gmra.mrb[28].mxu0 %vm744_vm3, %v912_v4 }
 0x38e   :  { %v2221_v10 = vpop.eup %2220  ;;  %2017 = vmatprep.mubr.msk.f32.mxu0 %vm744_vm3, %v913_v33  ;;  %v915_v24 = vmul.f32 %v2219_v19, %v2668_v63 }
 0x38f   :  { %v888_v11 = vpop.xlane.xlu0 %887  ;;  %v914_v17 = vmul.f32 %v2221_v10, %v2670_v5 }
 0x390   :  { %2230 = vrcp.f32 %v888_v11 }
 0x391   :  { %v2223_v22 = vpop.eup %2222  ;;  %2018 = vmatmul.mubr.msk.f32.gmra.mrb[30].mxu0 %vm744_vm3, %v914_v17 }
 0x392   :  { %v2225_v37 = vpop.eup %2224  ;;  %2020 = vmatprep.mubr.msk.f32.mxu0 %vm744_vm3, %v915_v24  ;;  %v917_v41 = vmul.f32 %v2223_v22, %v2676_v36  ;;  %v2759_v36 = vld [vmem:[%s157_s27] ss:$0 sm:$0xff] }
 0x393   :  { %v916_v23 = vmul.f32 %v2225_v37, %v2678_v16  ;;  %v1538_v16 = vpop.permute.xlu1 %1537 }
 0x394   :  { %vm1546_vm5 = vcmp.eq.s32.totalorder %v1538_v16, %v2759_v36 }
 0x395   :  { %v2227_v34 = vpop.eup %2226  ;;  %2021 = vmatmul.mubr.msk.f32.gmra.mrb[32].mxu0 %vm744_vm3, %v916_v23 }
 0x396   :  { %v2229_v35 = vpop.eup %2228  ;;  %2023 = vmatprep.mubr.msk.f32.mxu0 %vm744_vm3, %v917_v41  ;;  %v919_v63 = vmul.f32 %v2227_v34, %v2687_v28  ;;  %v2260_v28 = vmov 1.0  }
 0x397   :  { %v918_v5 = vmul.f32 %v2229_v35, %v2689_v29  ;;  %v1335_v29 = vld [vmem:[%s2830_s14 + $0x30] sm:$0xff] }
 0x398   :  { %v2120_v47 = vpack.c.bf16 %v1336_v44, %v1335_v29 }
 0x399   :  { %2024 = vmatmul.mubr.msk.f32.gmra.mrb[34].mxu0 %vm744_vm3, %v918_v5 }
 0x39a   :  { %v2231_v42 = vpop.eup %2230  ;;  %2026 = vmatprep.mubr.msk.f32.mxu0 %vm744_vm3, %v919_v63  ;;  %2121 = vmatprep.subr.bf16.mxu1 %v2120_v47 }
 0x39b   :  { %v920_v43 = vmul.f32 %v2231_v42, %v2695_v40  ;;  %2123 = vmatpush3.bf16.msra.mxu1 %v2120_v47  ;;  %v1984_v40 = vpop.f32.mrb[12].mxu1 }
 0x39c   :  { %v1046_v49 = vpop.f32.mrb[13].mxu1 }
 0x39d   :  { %2027 = vmatmul.mubr.msk.f32.gmra.mrb[36].mxu0 %vm744_vm3, %v920_v43  ;;  %v1987_v50 = vpop.f32.mrb[14].mxu1 }
 0x39e   :  { %2101 = vmatprep.mubr.msk.f32.mxu0 %vm1546_vm5, %v2260_v28  ;;  %v1056_v51 = vpop.f32.mrb[15].mxu1 }
 0x39f   :  { %v1990_v52 = vpop.f32.mrb[16].mxu1 }
 0x3a0   :  { %v1066_v53 = vpop.f32.mrb[17].mxu1 }
 0x3a1   :  { %v1993_v54 = vpop.f32.mrb[18].mxu1 }
 0x3a2   :  { %v1076_v56 = vpop.f32.mrb[19].mxu1 }
 0x3a3   :  { %v1996_v58 = vpop.f32.mrb[20].mxu1 }
 0x3a4   :  { %v1086_v59 = vpop.f32.mrb[21].mxu1 }
 0x3a5   :  { %v1999_v61 = vpop.f32.mrb[22].mxu1 }
 0x3a6   :  { %v1096_v1 = vpop.f32.mrb[23].mxu1 }
 0x3a7   :  { %v2002_v2 = vpop.f32.mrb[24].mxu1 }
 0x3a8   :  { %v1106_v0 = vpop.f32.mrb[25].mxu1 }
 0x450   :  { %v2007_v6 = vpop.f32.mrb[22].mxu0 }
 0x451   :  { %v1314_v9 = vmul.f32 %v2007_v6, %v2723_v60  ;;  %v1234_v12 = vpop.f32.mrb[23].mxu0 }
 0x452   :  { %v1313_v13 = vmul.f32 %v1234_v12, %v1036_v48 }
 0x454   :  { %2045 = vmatprep.mubr.msk.f32.mxu1 %vm1337_vm6, %v1313_v13 }
 0x455   :  { %2046 = vmatmul.mubr.msk.f32.vlgmr.msra.gmra.mrb[26].mxu1 %vm1337_vm6, %v1314_v9 }
 0x458   :  { %v2010_v14 = vpop.f32.mrb[24].mxu0 }
 0x459   :  { %v1316_v15 = vmul.f32 %v2010_v14, %v1984_v40  ;;  %v1244_v8 = vpop.f32.mrb[25].mxu0 }
 0x45a   :  { %v1315_v20 = vmul.f32 %v1244_v8, %v1046_v49 }
 0x45c   :  { %v2013_v21 = vpop.f32.mrb[26].mxu0  ;;  %2048 = vmatprep.mubr.msk.f32.mxu1 %vm1337_vm6, %v1315_v20 }
 0x45d   :  { %v1318_v27 = vmul.f32 %v2013_v21, %v1987_v50  ;;  %v1254_v46 = vpop.f32.mrb[27].mxu0  ;;  %2049 = vmatmul.mubr.msk.f32.gmra.mrb[28].mxu1 %vm1337_vm6, %v1316_v15 }
 0x45e   :  { %v1317_v30 = vmul.f32 %v1254_v46, %v1056_v51 }
 0x460   :  { %v2016_v60 = vpop.f32.mrb[28].mxu0  ;;  %2051 = vmatprep.mubr.msk.f32.mxu1 %vm1337_vm6, %v1317_v30 }
 0x461   :  { %v1320_v45 = vmul.f32 %v2016_v60, %v1990_v52  ;;  %v1264_v31 = vpop.f32.mrb[29].mxu0  ;;  %2052 = vmatmul.mubr.msk.f32.gmra.mrb[30].mxu1 %vm1337_vm6, %v1318_v27 }
 0x462   :  { %v1319_v18 = vmul.f32 %v1264_v31, %v1066_v53 }
 0x464   :  { %v2019_v25 = vpop.f32.mrb[30].mxu0  ;;  %2054 = vmatprep.mubr.msk.f32.mxu1 %vm1337_vm6, %v1319_v18 }
 0x465   :  { %v1322_v32 = vmul.f32 %v2019_v25, %v1993_v54  ;;  %v1274_v55 = vpop.f32.mrb[31].mxu0  ;;  %2055 = vmatmul.mubr.msk.f32.gmra.mrb[32].mxu1 %vm1337_vm6, %v1320_v45 }
 0x466   :  { %v1321_v38 = vmul.f32 %v1274_v55, %v1076_v56 }
 0x468   :  { %v2022_v39 = vpop.f32.mrb[32].mxu0  ;;  %2057 = vmatprep.mubr.msk.f32.mxu1 %vm1337_vm6, %v1321_v38 }
 0x469   :  { %v1324_v57 = vmul.f32 %v2022_v39, %v1996_v58  ;;  %v1284_v3 = vpop.f32.mrb[33].mxu0  ;;  %2058 = vmatmul.mubr.msk.f32.gmra.mrb[34].mxu1 %vm1337_vm6, %v1322_v32  ;;  %v1541_v58 = vpop.permute.xlu0 %1540 }
 0x46a   :  { %v1323_v62 = vmul.f32 %v1284_v3, %v1086_v59  ;;  %vm1547_vm7 = vcmp.eq.s32.totalorder %v1541_v58, %v2759_v36  ;;  %v1553_v59 = vld [vmem:[#allocation2 + $0x8] sm:$0xff] }
 0x46c   :  { %v2025_v7 = vpop.f32.mrb[34].mxu0  ;;  %2060 = vmatprep.mubr.msk.f32.mxu1 %vm1337_vm6, %v1323_v62 }
 0x46d   :  { %v1326_v33 = vmul.f32 %v2025_v7, %v1999_v61  ;;  %v1294_v26 = vpop.f32.mrb[35].mxu0  ;;  %2061 = vmatmul.mubr.msk.f32.gmra.mrb[36].mxu1 %vm1337_vm6, %v1324_v57  ;;  %v1552_v61 = vld [vmem:[#allocation2] sm:$0xff] }
 0x46e   :  { %v1325_v4 = vmul.f32 %v1294_v26, %v1096_v1 }
 0x470   :  { %v2028_v19 = vpop.f32.mrb[36].mxu0  ;;  %2063 = vmatprep.mubr.msk.f32.mxu1 %vm1337_vm6, %v1325_v4 }
 0x471   :  { %v1328_v10 = vmul.f32 %v2028_v19, %v2002_v2  ;;  %v1304_v24 = vpop.f32.mrb[37].mxu0  ;;  %2064 = vmatmul.mubr.msk.f32.gmra.mrb[38].mxu1 %vm1337_vm6, %v1326_v33 }
 0x472   :  { %v1327_v11 = vmul.f32 %v1304_v24, %v1106_v0 }
 0x474   :  { %2066 = vmatprep.mubr.msk.f32.mxu1 %vm1337_vm6, %v1327_v11 }
 0x475   :  { %2067 = vmatmul.mubr.msk.f32.gmra.mrb[40].mxu1 %vm1337_vm6, %v1328_v10 }
 0x528   :  { %v2047_v17 = vpop.f32.mrb[26].mxu1 }
 0x529   :  { %v1452_v22 = vpop.f32.mrb[27].mxu1 }
 0x52a   :  { %v2124_v37 = vpack.c.bf16 %v2047_v17, %v1452_v22 }
 0x52c   :  { %2125 = vmatprep.subr.bf16.mxu0 %v2124_v37 }
 0x52d   :  { %2127 = vmatpush3.bf16.msra.mxu0 %v2124_v37 }
 0x530   :  { %v2050_v41 = vpop.f32.mrb[28].mxu1 }
 0x531   :  { %v1462_v23 = vpop.f32.mrb[29].mxu1 }
 0x532   :  { %v2128_v34 = vpack.c.bf16 %v2050_v41, %v1462_v23 }
 0x534   :  { %v2053_v35 = vpop.f32.mrb[30].mxu1  ;;  %2129 = vmatprep.subr.bf16.mxu0 %v2128_v34 }
 0x535   :  { %v1472_v63 = vpop.f32.mrb[31].mxu1  ;;  %2131 = vmatpush3.bf16.msra.mxu0 %v2128_v34 }
 0x536   :  { %v2132_v5 = vpack.c.bf16 %v2053_v35, %v1472_v63 }
 0x538   :  { %v2056_v42 = vpop.f32.mrb[32].mxu1  ;;  %2133 = vmatprep.subr.bf16.mxu0 %v2132_v5 }
 0x539   :  { %v1482_v16 = vpop.f32.mrb[33].mxu1  ;;  %2135 = vmatpush3.bf16.msra.mxu0 %v2132_v5 }
 0x53a   :  { %v2136_v43 = vpack.c.bf16 %v2056_v42, %v1482_v16 }
 0x53c   :  { %v2059_v29 = vpop.f32.mrb[34].mxu1  ;;  %2137 = vmatprep.subr.bf16.mxu0 %v2136_v43 }
 0x53d   :  { %v1492_v44 = vpop.f32.mrb[35].mxu1  ;;  %2139 = vmatpush3.bf16.msra.mxu0 %v2136_v43 }
 0x53e   :  { %v2140_v47 = vpack.c.bf16 %v2059_v29, %v1492_v44 }
 0x540   :  { %v2062_v48 = vpop.f32.mrb[36].mxu1  ;;  %2141 = vmatprep.subr.bf16.mxu0 %v2140_v47 }
 0x541   :  { %v1502_v40 = vpop.f32.mrb[37].mxu1  ;;  %2143 = vmatpush3.bf16.msra.mxu0 %v2140_v47 }
 0x542   :  { %v2144_v49 = vpack.c.bf16 %v2062_v48, %v1502_v40 }
 0x544   :  { %v2065_v50 = vpop.f32.mrb[38].mxu1  ;;  %2145 = vmatprep.subr.bf16.mxu0 %v2144_v49 }
 0x545   :  { %v1512_v51 = vpop.f32.mrb[39].mxu1  ;;  %2147 = vmatpush3.bf16.msra.mxu0 %v2144_v49 }
 0x546   :  { %v2148_v52 = vpack.c.bf16 %v2065_v50, %v1512_v51 }
 0x548   :  { %v2068_v53 = vpop.f32.mrb[40].mxu1  ;;  %2149 = vmatprep.subr.bf16.mxu0 %v2148_v52 }
 0x549   :  { %v1522_v54 = vpop.f32.mrb[41].mxu1  ;;  %2151 = vmatpush3.bf16.msra.mxu0 %v2148_v52 }
 0x54a   :  { %v2152_v56 = vpack.c.bf16 %v2068_v53, %v1522_v54 }
 0x54c   :  { %2153 = vmatprep.subr.bf16.mxu0 %v2152_v56 }
 0x54d   :  { %2155 = vmatpush3.bf16.msra.mxu0 %v2152_v56 }
 0x550   :  { %2102 = vmatmul.mubr.msk.f32.vlgmr.msra.gmra.mrb[38].mxu0 %vm1547_vm7, %v2260_v28 }
 0x623   :  { %v2103_v1 = vpop.f32.mrb[38].mxu0 }
 0x624   :  { %v1630_v2 = vadd.f32 %v2103_v1, %v1553_v59  ;;  %v1620_v0 = vpop.f32.mrb[39].mxu0 }
 0x625   :  { %v1629_v6 = vadd.f32 %v1620_v0, %v1552_v61 }
 0x626   :  { %1632 = vst.msk [vmem:[#allocation2 + $0x8] sm:$0xff] %vm186_vm0, %v1630_v2 }
 0x627   :  { %1631 = vst.msk [vmem:[#allocation2] sm:$0xff] %vm186_vm0, %v1629_v6 }
 0x628 PF:  { %v1638_v9 = vld [vmem:[%s2824_s8] sm:$0xff]  ;;  %v2261_v12 = vmov 0   ;;  %v1639_v36 = vld [vmem:[%s2824_s8 + $0x8] sm:$0xff]  ;;  %s2262_s13 = smov [#allocation6]  }
 0x629   :  { %2232 = vset.pattern.permute.xlu0 %v2261_v12  ;;  %v1811_v13 = vld [vmem:[%s2828_s12] ss:$0 sm:$0xff]  ;;  %s1669_s29 = sshll.u32 %s2262_s13, 4  ;;  %s1670_s29 = int_to_ptr.vmem [resolvable:$true] %s1669_s29 }
 0x62a   :  { %1642 = vperm.xlu0 %2232, %v1638_v9   ;;  %s2233_s8 = scalar_lea.vmem %s1670_s29, 256  ;;  %p2238_p5 = scmp.lt.s32.totalorder %s1670_s29, %s1670_s29 }
 0x62b   :  { %p2234_p4 = scmp.ne.s32.totalorder %s1670_s29, %s2233_s8  ;;  %p2239_p6 = scmp.lt.s32.totalorder %s2233_s8, %s2233_s8 }
 0x62d   :  { %v1637_v8 = vld [vmem:[#allocation2 + $0x8] sm:$0xff]  ;;  %p2240_p7 = por %p2239_p6, %p2238_p5 }
 0x62e   :  { %1647 = vperm.xlu0 %2232, %v1639_v36   ;;  %v1636_v28 = vld [vmem:[#allocation2] sm:$0xff] }
 0x62f   :  { %p2241_p8 = pnand %p2240_p7, %p2234_p4 }
 0x6a9   :  { %v1643_v14 = vpop.permute.xlu0 %1642 }
 0x6aa   :  { %v1650_v15 = vmul.f32 %v1643_v14, %v1636_v28 }
 0x6ac   :  { %v1659_v20 = vadd.f32 %v1811_v13, %v1650_v15 }
 0x6ad   :  { %v1648_v21 = vpop.permute.xlu0 %1647 }
 0x6ae   :  { %1662 = vst.msk [vmem:[#allocation6] sm:$0xff] %vm186_vm0, %v1659_v20  ;;  %v1651_v27 = vmul.f32 %v1648_v21, %v1637_v8 }
 0x6b0   :  { %v1660_v46 = vadd.f32 %v1811_v13, %v1651_v27 }
 0x6b2   :  { %1663 = vst.msk [vmem:[#allocation6 + $0x8] sm:$0xff] %vm186_vm0, %v1660_v46 }
 0x6b3   :  { %2244 = shalt.err (!%p2241_p8)
}
 0x6b4   :  { %s2245_s16 = scalar_lea.hbm %s2831_s15, 256 }
 0x6b5   :  { %p2246_p9 = scmp.ne.s32.totalorder %s2831_s15, %s2245_s16  ;;  %p2249_p10 = scmp.lt.u32.totalorder %s2245_s16, %s2831_s15 }
 0x6b7   :  { %p2251_p11 = pnand %p2249_p10, %p2246_p9 }
 0x6b9   :  { %2254 = shalt.err (!%p2251_p11)
}
 0x6ba   :  { %s2263_s20 = smov 128   ;;  %s2264_s2 = smov 8  }
 0x6bb   :  { %1675 = dma.vmem_to_hbm [thread:$0]  %s1670_s29, 256, %s2831_s15, [#allocation7], %s2263_s20, %s2263_s20, %s2264_s2  }
 0x6bc   :  { %2255 = dma.done.wait [#allocation7], 256  }
 0x6bd   :  { %2256 = vsyncadd [#allocation7], 4294967040 }
 0x6be   :  { %1679 = vsyncpa [#allocation7], 1 }

</bundles_post_ra>
